<compile_context>
chip_gen: v6e
topology: v6e:2x2x1
jax: 0.10.0
libtpu: 0.0.40
codegen_flags: <defaults>
</compile_context>

<pallas_src>
import jax
import jax.numpy as jnp
from jax.experimental import pallas as pl
from jax.experimental.pallas import tpu as pltpu


def _fused_add_relu_conv1x1_kernel(a_ref, b_ref, w_ref, o_ref):
    # a_ref, b_ref: [C_in, TM]    (channel-major pixel tile)
    # w_ref:        [C_out, C_in] (resident across the whole grid)
    # o_ref:        [C_out, TM]
    x = jnp.maximum(a_ref[...] + b_ref[...], 0.0)
    o_ref[...] = jnp.dot(
        w_ref[...], x, preferred_element_type=jnp.float32
    ).astype(o_ref.dtype)


def _pick_tm(n, hw):
    """Pixel-tile size: 1 step/image normally; 2 lane-aligned tiles on v7x@N=1."""
    try:
        kind = jax.devices()[0].device_kind.lower()
        multi_core = "v7" in kind  # v7x: 2 TensorCores per chip
    except Exception:  # pragma: no cover - defensive
        multi_core = False
    if n == 1 and multi_core:
        tm = ((pl.cdiv(hw, 2) + 127) // 128) * 128  # 128-aligned half
        if tm < hw:
            return tm
    return hw  # full pixel dim -> single grid step per image


def add_relu_conv1x1(x57, x65, weight, *, tm=None):
    """x57, x65: [N, C_in, H, W] float32.  weight: [C_out, C_in, 1, 1]."""
    N, C_in, H, W = x57.shape
    C_out = weight.shape[0]
    HW = H * W

    if tm is None:
        tm = _pick_tm(N, HW)

    # Free reshapes: NCHW is per-image channel-major already (no transposes).
    a = x57.reshape(N, C_in, HW)
    b = x65.reshape(N, C_in, HW)
    w = weight.reshape(C_out, C_in)

    grid = (N, pl.cdiv(HW, tm))  # batch axis keeps N>1 correct

    cost = pl.CostEstimate(
        flops=2 * N * HW * C_in * C_out,
        transcendentals=0,
        bytes_accessed=4 * (2 * N * HW * C_in + C_in * C_out + N * HW * C_out),
    )

    out = pl.pallas_call(
        _fused_add_relu_conv1x1_kernel,
        out_shape=jax.ShapeDtypeStruct((N, C_out, HW), x57.dtype),
        grid_spec=pl.GridSpec(
            grid=grid,
            in_specs=[
                # batch dim squeezed out of the kernel view
                pl.BlockSpec((None, C_in, tm), lambda n, m: (n, 0, m)),
                pl.BlockSpec((None, C_in, tm), lambda n, m: (n, 0, m)),
                pl.BlockSpec((C_out, C_in), lambda n, m: (0, 0)),
            ],
            out_specs=pl.BlockSpec((None, C_out, tm), lambda n, m: (n, 0, m)),
        ),
        compiler_params=pltpu.CompilerParams(
            dimension_semantics=("parallel", "parallel"),
        ),
        cost_estimate=cost,
    )(a, b, w)

    # [N, C_out, H*W] -> NCHW is also a free reshape.
    return out.reshape(N, C_out, H, W)


if __name__ == "__main__":
    key = jax.random.PRNGKey(0)
    k1, k2, k3 = jax.random.split(key, 3)

    # Shapes implied by the module: Conv2d(192, 192, 1x1, bias=False), 28x28.
    N, C, H, W = 1, 192, 28, 28
    x57 = jax.random.normal(k1, (N, C, H, W), dtype=jnp.float32)
    x65 = jax.random.normal(k2, (N, C, H, W), dtype=jnp.float32)
    weight = jax.random.normal(k3, (C, C, 1, 1), dtype=jnp.float32) * 0.05

    out = add_relu_conv1x1(x57, x65, weight)
    out = jax.block_until_ready(out)

    # Pure-JAX reference (same semantics as torch add -> relu -> 1x1 conv).
    ref = jnp.einsum(
        "nchw,oc->nohw", jnp.maximum(x57 + x65, 0.0), weight.reshape(C, C)
    )
    assert out.shape == (N, C, H, W)
    assert jnp.allclose(out, ref, atol=2e-3, rtol=2e-3)

    print("KERNEL_OK")
</pallas_src>

<mosaic_0001>
module attributes {stable_mosaic.version = 11 : i64} {
  func.func @_fused_add_relu_conv1x1_kernel(%arg0: i32, %arg1: i32, %arg2: memref<1x192x784xf32, #tpu.memory_space<vmem>>, %arg3: memref<1x192x784xf32, #tpu.memory_space<vmem>>, %arg4: memref<192x192xf32, #tpu.memory_space<vmem>>, %arg5: memref<1x192x784xf32, #tpu.memory_space<vmem>>) attributes {dimension_semantics = [#tpu.dimension_semantics<parallel>, #tpu.dimension_semantics<parallel>], iteration_bounds = array<i64: 1, 1>, scalar_prefetch = 0 : i64, scratch_operands = 0 : i64, tpu.core_type = #tpu.core_type<tc>, window_params = [{transform_indices = @transform_0, window_bounds = array<i64: 1, 192, 784>}, {transform_indices = @transform_1, window_bounds = array<i64: 1, 192, 784>}, {pipeline_mode = #tpu.pipeline_mode<synchronous>, transform_indices = @transform_2, window_bounds = array<i64: 192, 192>}, {transform_indices = @transform_3, window_bounds = array<i64: 1, 192, 784>}]} {
    %c0 = arith.constant 0 : index
    %c0_0 = arith.constant 0 : index
    %c0_1 = arith.constant 0 : index
    %0 = vector.load %arg2[%c0, %c0_0, %c0_1] : memref<1x192x784xf32, #tpu.memory_space<vmem>>, vector<1x192x784xf32>
    %1 = vector.shape_cast %0 : vector<1x192x784xf32> to vector<192x784xf32>
    %c0_2 = arith.constant 0 : index
    %c0_3 = arith.constant 0 : index
    %c0_4 = arith.constant 0 : index
    %2 = vector.load %arg3[%c0_2, %c0_3, %c0_4] : memref<1x192x784xf32, #tpu.memory_space<vmem>>, vector<1x192x784xf32>
    %3 = vector.shape_cast %2 : vector<1x192x784xf32> to vector<192x784xf32>
    %4 = arith.addf %1, %3 : vector<192x784xf32>
    %cst = arith.constant 0.000000e+00 : f32
    %5 = vector.broadcast %cst : f32 to vector<192x784xf32>
    %6 = arith.maximumf %4, %5 : vector<192x784xf32>
    %c0_5 = arith.constant 0 : index
    %c0_6 = arith.constant 0 : index
    %7 = vector.load %arg4[%c0_5, %c0_6] : memref<192x192xf32, #tpu.memory_space<vmem>>, vector<192x192xf32>
    %cst_7 = arith.constant dense<0.000000e+00> : vector<192x784xf32>
    %8 = tpu.matmul %7, %6, %cst_7 {dimension_numbers = #tpu.dot_dimension_numbers<[1], [0], [0], [1], [0, 0, 1, 1], [], []>} : vector<192x192xf32>, vector<192x784xf32>, vector<192x784xf32> -> vector<192x784xf32>
    %c0_8 = arith.constant 0 : index
    %c0_9 = arith.constant 0 : index
    %c0_10 = arith.constant 0 : index
    %9 = vector.load %arg5[%c0_8, %c0_9, %c0_10] : memref<1x192x784xf32, #tpu.memory_space<vmem>>, vector<1x192x784xf32>
    %10 = vector.shape_cast %9 : vector<1x192x784xf32> to vector<192x784xf32>
    %11 = vector.shape_cast %8 : vector<192x784xf32> to vector<1x192x784xf32>
    tpu.vector_store %arg5[%c0_8, %c0_9, %c0_10], %11 {strides = array<i32>} : memref<1x192x784xf32, #tpu.memory_space<vmem>>, vector<1x192x784xf32>,
    return
  }
  func.func @transform_0(%arg0: i32, %arg1: i32) -> (i32, i32, i32) {
    %c0_i32 = arith.constant 0 : i32
    %c0_i32_0 = arith.constant 0 : i32
    return %arg0, %c0_i32, %arg1 : i32, i32, i32
  }
  func.func @transform_1(%arg0: i32, %arg1: i32) -> (i32, i32, i32) {
    %c0_i32 = arith.constant 0 : i32
    %c0_i32_0 = arith.constant 0 : i32
    return %arg0, %c0_i32, %arg1 : i32, i32, i32
  }
  func.func @transform_2(%arg0: i32, %arg1: i32) -> (i32, i32) {
    %c0_i32 = arith.constant 0 : i32
    %c0_i32_0 = arith.constant 0 : i32
    %c0_i32_1 = arith.constant 0 : i32
    return %c0_i32, %c0_i32_0 : i32, i32
  }
  func.func @transform_3(%arg0: i32, %arg1: i32) -> (i32, i32, i32) {
    %c0_i32 = arith.constant 0 : i32
    %c0_i32_0 = arith.constant 0 : i32
    return %arg0, %c0_i32, %arg1 : i32, i32, i32
  }
}

</mosaic_0001>

<bundles_post_ra>
// kernel: tpu_custom_call.1
= control target key start
LH: loop header
LB: loop body
LE: loop exit
PB: predicated region body
PF: predicated region fallthrough
CT: control target
= control target key end

     0   :  { %8 = vsyncpa [#allocation3], 0  ;;  %s2506_s0 = inlined_call_operand.hbm [shape: f32[1,192,784], index: 0, kind: input, shape index: {}]   ;;  %s2507_s1 = inlined_call_operand.hbm [shape: f32[1,192,784], index: 1, kind: input, shape index: {}]   ;;  %s2508_s2 = inlined_call_operand.hbm [shape: f32[192,192], index: 2, kind: input, shape index: {}]   ;;  %s2509_s3 = inlined_call_operand.hbm [shape: f32[1,192,784], index: 3, kind: output, shape index: {}]  }
   0x1   :  { %9 = vsyncpa [#allocation6], 0 }
   0x2   :  { %10 = vsyncpa [#allocation4], 0  ;;  %s2043_s12 = smov [#allocation5]   ;;  %s2044_s14 = smov [#allocation2]  }
   0x3   :  { %s28_s13 = sshll.u32 %s2043_s12, 4  ;;  %s16_s15 = sshll.u32 %s2044_s14, 4  ;;  %s29_s13 = int_to_ptr.vmem [resolvable:$true] %s28_s13  ;;  %s17_s15 = int_to_ptr.vmem [resolvable:$true] %s16_s15 }
   0x4   :  { %s1965_s16 = scalar_lea.vmem %s29_s13, 21504  ;;  %p1970_p1 = scmp.lt.s32.totalorder %s29_s13, %s29_s13 }
   0x5   :  { %p1966_p0 = scmp.ne.s32.totalorder %s29_s13, %s1965_s16  ;;  %p1971_p2 = scmp.lt.s32.totalorder %s1965_s16, %s1965_s16 }
   0x7   :  { %p1972_p3 = por %p1971_p2, %p1970_p1 }
   0x9   :  { %p1973_p4 = pnand %p1972_p3, %p1966_p0 }
   0xb   :  { %1976 = shalt.err (!%p1973_p4)
}
   0xc   :  { %s2045_s17 = smov 896   ;;  %s2046_s18 = smov 56  }
   0xd   :  { %34 = dma.hbm_to_vmem [thread:$0]  %s2507_s1, 21504, %s29_s13, [#allocation6], %s2045_s17, %s2045_s17, %s2046_s18  }
   0xe   :  { %s1985_s21 = scalar_lea.vmem %s17_s15, 21504  ;;  %p1990_p6 = scmp.lt.s32.totalorder %s17_s15, %s17_s15 }
   0xf   :  { %p1986_p5 = scmp.ne.s32.totalorder %s17_s15, %s1985_s21  ;;  %p1991_p7 = scmp.lt.s32.totalorder %s1985_s21, %s1985_s21 }
  0x11   :  { %p1992_p8 = por %p1991_p7, %p1990_p6 }
  0x13   :  { %p1993_p9 = pnand %p1992_p8, %p1986_p5 }
  0x15   :  { %1996 = shalt.err (!%p1993_p9)
}
  0x16   :  { %22 = dma.hbm_to_vmem [thread:$0]  %s2506_s0, 21504, %s17_s15, [#allocation3], %s2045_s17, %s2045_s17, %s2046_s18  }
  0x17   :  { %s2047_s24 = smov [#allocation7]  }
  0x18   :  { %s40_s25 = sshll.u32 %s2047_s24, 4  ;;  %s41_s25 = int_to_ptr.vmem [resolvable:$true] %s40_s25 }
  0x19   :  { %s2005_s26 = scalar_lea.vmem %s41_s25, 6144  ;;  %p2010_p11 = scmp.lt.s32.totalorder %s41_s25, %s41_s25 }
  0x1a   :  { %p2006_p10 = scmp.ne.s32.totalorder %s41_s25, %s2005_s26  ;;  %p2011_p12 = scmp.lt.s32.totalorder %s2005_s26, %s2005_s26 }
  0x1c   :  { %p2012_p13 = por %p2011_p12, %p2010_p11 }
  0x1e   :  { %p2013_p0 = pnand %p2012_p13, %p2006_p10 }
  0x20   :  { %2016 = shalt.err (!%p2013_p0)
}
  0x21   :  { %s2048_s1 = smov 256   ;;  %s2049_s27 = smov 16  }
  0x22   :  { %46 = dma.hbm_to_vmem [thread:$0]  %s2508_s2, 6144, %s41_s25, [#allocation6], %s2048_s1, %s2048_s1, %s2049_s27  }
  0x23   :  { %2037 = dma.done.wait [#allocation3], 21504  }
  0x24   :  { %2038 = vsyncadd [#allocation3], 4294945792 }
  0x25   :  { %2039 = dma.done.wait [#allocation6], 27648  }
  0x26   :  { %2040 = vsyncadd [#allocation6], 4294939648  ;;  %v162_v0 = vld [vmem:[#allocation2 + $0x350] sm:$0xff]  ;;  %v161_v2 = vld [vmem:[#allocation2 + $0x348] sm:$0xff]  ;;  %vm776_vm0 = vcmask 523264   ;;  %vm1667_vm1 = vcmask 130048  }
  0x27   :  { %v330_v1 = vld [vmem:[#allocation5 + $0x350] sm:$0xff]  ;;  %v329_v4 = vld [vmem:[#allocation5 + $0x348] sm:$0xff]  ;;  %v164_v5 = vld [vmem:[#allocation2 + $0x360] sm:$0xff]  ;;  %s2051_s0 = smov [#allocation8]  }
  0x28   :  { %v498_v3 = vadd.f32 %v330_v1, %v162_v0  ;;  %v332_v6 = vld [vmem:[#allocation5 + $0x360] sm:$0xff]  ;;  %v497_v7 = vadd.f32 %v329_v4, %v161_v2  ;;  %v155_v9 = vld [vmem:[#allocation2 + $0x318] sm:$0xff]  ;;  %v154_v15 = vld [vmem:[#allocation2 + $0x310] sm:$0xff]  ;;  %s1835_s2 = sshll.u32 %s2051_s0, 4  ;;  %s1836_s2 = int_to_ptr.vmem [resolvable:$true] %s1835_s2 }
  0x29   :  { %v500_v8 = vadd.f32 %v332_v6, %v164_v5  ;;  %v323_v10 = vld [vmem:[#allocation5 + $0x318] sm:$0xff]  ;;  %v322_v16 = vld [vmem:[#allocation5 + $0x310] sm:$0xff]  ;;  %v157_v21 = vld [vmem:[#allocation2 + $0x328] sm:$0xff]  ;;  %s2017_s30 = scalar_lea.vmem %s1836_s2, 21504  ;;  %p2022_p2 = scmp.lt.s32.totalorder %s1836_s2, %s1836_s2 }
  0x2a   :  { %v163_v11 = vld [vmem:[#allocation2 + $0x358] sm:$0xff]  ;;  %v666_v12 = vmax.f32 %v498_v3, 0.0  ;;  %v491_v13 = vadd.f32 %v323_v10, %v155_v9  ;;  %v665_v17 = vmax.f32 %v497_v7, 0.0  ;;  %v490_v20 = vadd.f32 %v322_v16, %v154_v15  ;;  %v325_v22 = vld [vmem:[#allocation5 + $0x328] sm:$0xff]  ;;  %v148_v23 = vld [vmem:[#allocation2 + $0x2e0] sm:$0xff]  ;;  %p2018_p1 = scmp.ne.s32.totalorder %s1836_s2, %s2017_s30  ;;  %p2023_p3 = scmp.lt.s32.totalorder %s2017_s30, %s2017_s30 }
  0x2b   :  { %v331_v14 = vld [vmem:[#allocation5 + $0x358] sm:$0xff]  ;;  %v668_v18 = vmax.f32 %v500_v8, 0.0  ;;  %v493_v25 = vadd.f32 %v325_v22, %v157_v21  ;;  %v316_v26 = vld [vmem:[#allocation5 + $0x2e0] sm:$0xff]  ;;  %v150_v35 = vld [vmem:[#allocation2 + $0x2f0] sm:$0xff] }
  0x2c   :  { %v499_v19 = vadd.f32 %v331_v14, %v163_v11  ;;  %849 = vmatprep.subr.mxu0 %v666_v12  ;;  %v659_v24 = vmax.f32 %v491_v13, 0.0  ;;  %v156_v27 = vld [vmem:[#allocation2 + $0x320] sm:$0xff]  ;;  %v658_v30 = vmax.f32 %v490_v20, 0.0  ;;  %v484_v31 = vadd.f32 %v316_v26, %v148_v23  ;;  %v147_v33 = vld [vmem:[#allocation2 + $0x2d8] sm:$0xff]  ;;  %v318_v38 = vld [vmem:[#allocation5 + $0x2f0] sm:$0xff]  ;;  %p2024_p4 = por %p2023_p3, %p2022_p2 }
  0x2d   :  { %v324_v28 = vld [vmem:[#allocation5 + $0x320] sm:$0xff]  ;;  %850 = vmatpush1.msra.mxu0 %v665_v17  ;;  %1058 = vmatprep.subr.mxu1 %v668_v18  ;;  %v315_v34 = vld [vmem:[#allocation5 + $0x2d8] sm:$0xff]  ;;  %v661_v36 = vmax.f32 %v493_v25, 0.0  ;;  %v141_v39 = vld [vmem:[#allocation2 + $0x2a8] sm:$0xff]  ;;  %v486_v43 = vadd.f32 %v318_v38, %v150_v35 }
  0x2e   :  { %v667_v29 = vmax.f32 %v499_v19, 0.0  ;;  %v492_v32 = vadd.f32 %v324_v28, %v156_v27  ;;  %851 = vmatprep.subr.mxu0 %v659_v24  ;;  %v483_v37 = vadd.f32 %v315_v34, %v147_v33  ;;  %v309_v40 = vld [vmem:[#allocation5 + $0x2a8] sm:$0xff]  ;;  %v652_v41 = vmax.f32 %v484_v31, 0.0  ;;  %v140_v47 = vld [vmem:[#allocation2 + $0x2a0] sm:$0xff]  ;;  %v143_v51 = vld [vmem:[#allocation2 + $0x2b8] sm:$0xff]  ;;  %p2025_p5 = pnand %p2024_p4, %p2018_p1 }
  0x2f   :  { %852 = vmatpush1.msra.mxu0 %v658_v30  ;;  %v477_v44 = vadd.f32 %v309_v40, %v141_v39  ;;  %v149_v45 = vld [vmem:[#allocation2 + $0x2e8] sm:$0xff]  ;;  %v308_v50 = vld [vmem:[#allocation5 + $0x2a0] sm:$0xff]  ;;  %v311_v52 = vld [vmem:[#allocation5 + $0x2b8] sm:$0xff]  ;;  %v654_v53 = vmax.f32 %v486_v43, 0.0 }
  0x30   :  { %1059 = vmatpush1.msra.mxu1 %v667_v29  ;;  %v660_v42 = vmax.f32 %v492_v32, 0.0  ;;  %v317_v46 = vld [vmem:[#allocation5 + $0x2e8] sm:$0xff]  ;;  %v651_v48 = vmax.f32 %v483_v37, 0.0  ;;  %853 = vmatprep.subr.mxu0 %v652_v41  ;;  %v476_v55 = vadd.f32 %v308_v50, %v140_v47  ;;  %v479_v56 = vadd.f32 %v311_v52, %v143_v51  ;;  %v134_v57 = vld [vmem:[#allocation2 + $0x270] sm:$0xff]  ;;  %v136_v5 = vld [vmem:[#allocation2 + $0x280] sm:$0xff] }
  0x31   :  { %1060 = vmatprep.subr.mxu1 %v661_v36  ;;  %v485_v49 = vadd.f32 %v317_v46, %v149_v45  ;;  %v645_v54 = vmax.f32 %v477_v44, 0.0  ;;  %v302_v58 = vld [vmem:[#allocation5 + $0x270] sm:$0xff]  ;;  %v133_v63 = vld [vmem:[#allocation2 + $0x268] sm:$0xff]  ;;  %v304_v6 = vld [vmem:[#allocation5 + $0x280] sm:$0xff] }
  0x32   :  { %1061 = vmatpush1.msra.mxu1 %v660_v42  ;;  %v142_v59 = vld [vmem:[#allocation2 + $0x2b0] sm:$0xff]  ;;  %854 = vmatpush1.msra.mxu0 %v651_v48  ;;  %v470_v61 = vadd.f32 %v302_v58, %v134_v57  ;;  %v301_v0 = vld [vmem:[#allocation5 + $0x268] sm:$0xff]  ;;  %v644_v1 = vmax.f32 %v476_v55, 0.0  ;;  %v647_v2 = vmax.f32 %v479_v56, 0.0  ;;  %v127_v7 = vld [vmem:[#allocation2 + $0x238] sm:$0xff]  ;;  %v472_v9 = vadd.f32 %v304_v6, %v136_v5 }
  0x33   :  { %v653_v60 = vmax.f32 %v485_v49, 0.0  ;;  %v310_v62 = vld [vmem:[#allocation5 + $0x2b0] sm:$0xff]  ;;  %1062 = vmatprep.subr.mxu1 %v654_v53  ;;  %855 = vmatprep.subr.mxu0 %v645_v54  ;;  %v469_v4 = vadd.f32 %v301_v0, %v133_v63  ;;  %v295_v10 = vld [vmem:[#allocation5 + $0x238] sm:$0xff]  ;;  %v129_v19 = vld [vmem:[#allocation2 + $0x248] sm:$0xff] }
  0x34   :  { %v478_v3 = vadd.f32 %v310_v62, %v142_v59  ;;  %v638_v8 = vmax.f32 %v470_v61, 0.0  ;;  %v135_v11 = vld [vmem:[#allocation2 + $0x278] sm:$0xff]  ;;  %856 = vmatpush1.msra.mxu0 %v644_v1  ;;  %v463_v15 = vadd.f32 %v295_v10, %v127_v7  ;;  %v126_v17 = vld [vmem:[#allocation2 + $0x230] sm:$0xff]  ;;  %v640_v20 = vmax.f32 %v472_v9, 0.0  ;;  %v297_v22 = vld [vmem:[#allocation5 + $0x248] sm:$0xff] }
  0x35   :  { %1063 = vmatpush1.msra.mxu1 %v653_v60  ;;  %v303_v12 = vld [vmem:[#allocation5 + $0x278] sm:$0xff]  ;;  %v637_v14 = vmax.f32 %v469_v4, 0.0  ;;  %v294_v18 = vld [vmem:[#allocation5 + $0x230] sm:$0xff]  ;;  %v120_v23 = vld [vmem:[#allocation2 + $0x200] sm:$0xff]  ;;  %v465_v27 = vadd.f32 %v297_v22, %v129_v19 }
  0x36   :  { %1064 = vmatprep.subr.mxu1 %v647_v2  ;;  %v646_v13 = vmax.f32 %v478_v3, 0.0  ;;  %v471_v16 = vadd.f32 %v303_v12, %v135_v11  ;;  %857 = vmatprep.subr.mxu0 %v638_v8  ;;  %v462_v21 = vadd.f32 %v294_v18, %v126_v17  ;;  %v288_v24 = vld [vmem:[#allocation5 + $0x200] sm:$0xff]  ;;  %v631_v25 = vmax.f32 %v463_v15, 0.0  ;;  %v119_v31 = vld [vmem:[#allocation2 + $0x1f8] sm:$0xff]  ;;  %v122_v35 = vld [vmem:[#allocation2 + $0x210] sm:$0xff] }
  0x37   :  { %858 = vmatpush1.msra.mxu0 %v637_v14  ;;  %v456_v28 = vadd.f32 %v288_v24, %v120_v23  ;;  %v128_v29 = vld [vmem:[#allocation2 + $0x240] sm:$0xff]  ;;  %v287_v34 = vld [vmem:[#allocation5 + $0x1f8] sm:$0xff]  ;;  %v290_v36 = vld [vmem:[#allocation5 + $0x210] sm:$0xff]  ;;  %v633_v37 = vmax.f32 %v465_v27, 0.0 }
  0x38   :  { %1065 = vmatpush1.msra.mxu1 %v646_v13  ;;  %v639_v26 = vmax.f32 %v471_v16, 0.0  ;;  %v296_v30 = vld [vmem:[#allocation5 + $0x240] sm:$0xff]  ;;  %v630_v32 = vmax.f32 %v462_v21, 0.0  ;;  %859 = vmatprep.subr.mxu0 %v631_v25  ;;  %v455_v39 = vadd.f32 %v287_v34, %v119_v31  ;;  %v458_v40 = vadd.f32 %v290_v36, %v122_v35  ;;  %v113_v41 = vld [vmem:[#allocation2 + $0x1c8] sm:$0xff]  ;;  %v115_v53 = vld [vmem:[#allocation2 + $0x1d8] sm:$0xff] }
  0x39   :  { %1066 = vmatprep.subr.mxu1 %v640_v20  ;;  %v464_v33 = vadd.f32 %v296_v30, %v128_v29  ;;  %v624_v38 = vmax.f32 %v456_v28, 0.0  ;;  %v281_v42 = vld [vmem:[#allocation5 + $0x1c8] sm:$0xff]  ;;  %v112_v47 = vld [vmem:[#allocation2 + $0x1c0] sm:$0xff]  ;;  %v283_v54 = vld [vmem:[#allocation5 + $0x1d8] sm:$0xff] }
  0x3a   :  { %1067 = vmatpush1.msra.mxu1 %v639_v26  ;;  %v121_v43 = vld [vmem:[#allocation2 + $0x208] sm:$0xff]  ;;  %860 = vmatpush1.msra.mxu0 %v630_v32  ;;  %v449_v45 = vadd.f32 %v281_v42, %v113_v41  ;;  %v280_v48 = vld [vmem:[#allocation5 + $0x1c0] sm:$0xff]  ;;  %v623_v49 = vmax.f32 %v455_v39, 0.0  ;;  %v626_v50 = vmax.f32 %v458_v40, 0.0  ;;  %v106_v55 = vld [vmem:[#allocation2 + $0x190] sm:$0xff]  ;;  %v451_v57 = vadd.f32 %v283_v54, %v115_v53 }
  0x3b   :  { %v632_v44 = vmax.f32 %v464_v33, 0.0  ;;  %v289_v46 = vld [vmem:[#allocation5 + $0x208] sm:$0xff]  ;;  %1068 = vmatprep.subr.mxu1 %v633_v37  ;;  %861 = vmatprep.subr.mxu0 %v624_v38  ;;  %v448_v52 = vadd.f32 %v280_v48, %v112_v47  ;;  %v274_v58 = vld [vmem:[#allocation5 + $0x190] sm:$0xff]  ;;  %v108_v3 = vld [vmem:[#allocation2 + $0x1a0] sm:$0xff] }
  0x3c   :  { %v457_v51 = vadd.f32 %v289_v46, %v121_v43  ;;  %v617_v56 = vmax.f32 %v449_v45, 0.0  ;;  %v114_v59 = vld [vmem:[#allocation2 + $0x1d0] sm:$0xff]  ;;  %862 = vmatpush1.msra.mxu0 %v623_v49  ;;  %v442_v63 = vadd.f32 %v274_v58, %v106_v55  ;;  %v105_v1 = vld [vmem:[#allocation2 + $0x188] sm:$0xff]  ;;  %v619_v4 = vmax.f32 %v451_v57, 0.0  ;;  %v276_v6 = vld [vmem:[#allocation5 + $0x1a0] sm:$0xff] }
  0x3d   :  { %1069 = vmatpush1.msra.mxu1 %v632_v44  ;;  %v282_v60 = vld [vmem:[#allocation5 + $0x1d0] sm:$0xff]  ;;  %v616_v62 = vmax.f32 %v448_v52, 0.0  ;;  %v273_v2 = vld [vmem:[#allocation5 + $0x188] sm:$0xff]  ;;  %v99_v7 = vld [vmem:[#allocation2 + $0x158] sm:$0xff]  ;;  %v444_v11 = vadd.f32 %v276_v6, %v108_v3 }
  0x3e   :  { %1070 = vmatprep.subr.mxu1 %v626_v50  ;;  %v625_v61 = vmax.f32 %v457_v51, 0.0  ;;  %v450_v0 = vadd.f32 %v282_v60, %v114_v59  ;;  %863 = vmatprep.subr.mxu0 %v617_v56  ;;  %v441_v5 = vadd.f32 %v273_v2, %v105_v1  ;;  %v267_v8 = vld [vmem:[#allocation5 + $0x158] sm:$0xff]  ;;  %v610_v9 = vmax.f32 %v442_v63, 0.0  ;;  %v98_v15 = vld [vmem:[#allocation2 + $0x150] sm:$0xff]  ;;  %v101_v19 = vld [vmem:[#allocation2 + $0x168] sm:$0xff] }
  0x3f   :  { %864 = vmatpush1.msra.mxu0 %v616_v62  ;;  %v435_v12 = vadd.f32 %v267_v8, %v99_v7  ;;  %v107_v13 = vld [vmem:[#allocation2 + $0x198] sm:$0xff]  ;;  %v266_v18 = vld [vmem:[#allocation5 + $0x150] sm:$0xff]  ;;  %v269_v20 = vld [vmem:[#allocation5 + $0x168] sm:$0xff]  ;;  %v612_v21 = vmax.f32 %v444_v11, 0.0 }
  0x40   :  { %1071 = vmatpush1.msra.mxu1 %v625_v61  ;;  %v618_v10 = vmax.f32 %v450_v0, 0.0  ;;  %v275_v14 = vld [vmem:[#allocation5 + $0x198] sm:$0xff]  ;;  %v609_v16 = vmax.f32 %v441_v5, 0.0  ;;  %865 = vmatprep.subr.mxu0 %v610_v9  ;;  %v434_v23 = vadd.f32 %v266_v18, %v98_v15  ;;  %v437_v24 = vadd.f32 %v269_v20, %v101_v19  ;;  %v92_v25 = vld [vmem:[#allocation2 + $0x120] sm:$0xff]  ;;  %v94_v37 = vld [vmem:[#allocation2 + $0x130] sm:$0xff] }
  0x41   :  { %1072 = vmatprep.subr.mxu1 %v619_v4  ;;  %v443_v17 = vadd.f32 %v275_v14, %v107_v13  ;;  %v603_v22 = vmax.f32 %v435_v12, 0.0  ;;  %v260_v26 = vld [vmem:[#allocation5 + $0x120] sm:$0xff]  ;;  %v91_v31 = vld [vmem:[#allocation2 + $0x118] sm:$0xff]  ;;  %v262_v38 = vld [vmem:[#allocation5 + $0x130] sm:$0xff] }
  0x42   :  { %1073 = vmatpush1.msra.mxu1 %v618_v10  ;;  %v100_v27 = vld [vmem:[#allocation2 + $0x160] sm:$0xff]  ;;  %866 = vmatpush1.msra.mxu0 %v609_v16  ;;  %v428_v29 = vadd.f32 %v260_v26, %v92_v25  ;;  %v259_v32 = vld [vmem:[#allocation5 + $0x118] sm:$0xff]  ;;  %v602_v33 = vmax.f32 %v434_v23, 0.0  ;;  %v605_v34 = vmax.f32 %v437_v24, 0.0  ;;  %v85_v39 = vld [vmem:[#allocation2 + $0xe8] sm:$0xff]  ;;  %v430_v41 = vadd.f32 %v262_v38, %v94_v37 }
  0x43   :  { %v611_v28 = vmax.f32 %v443_v17, 0.0  ;;  %v268_v30 = vld [vmem:[#allocation5 + $0x160] sm:$0xff]  ;;  %1074 = vmatprep.subr.mxu1 %v612_v21  ;;  %867 = vmatprep.subr.mxu0 %v603_v22  ;;  %v427_v36 = vadd.f32 %v259_v32, %v91_v31  ;;  %v253_v42 = vld [vmem:[#allocation5 + $0xe8] sm:$0xff]  ;;  %v87_v51 = vld [vmem:[#allocation2 + $0xf8] sm:$0xff] }
  0x44   :  { %v436_v35 = vadd.f32 %v268_v30, %v100_v27  ;;  %v596_v40 = vmax.f32 %v428_v29, 0.0  ;;  %v93_v43 = vld [vmem:[#allocation2 + $0x128] sm:$0xff]  ;;  %868 = vmatpush1.msra.mxu0 %v602_v33  ;;  %v421_v47 = vadd.f32 %v253_v42, %v85_v39  ;;  %v84_v49 = vld [vmem:[#allocation2 + $0xe0] sm:$0xff]  ;;  %v598_v52 = vmax.f32 %v430_v41, 0.0  ;;  %v255_v54 = vld [vmem:[#allocation5 + $0xf8] sm:$0xff] }
  0x45   :  { %1075 = vmatpush1.msra.mxu1 %v611_v28  ;;  %v261_v44 = vld [vmem:[#allocation5 + $0x128] sm:$0xff]  ;;  %v595_v46 = vmax.f32 %v427_v36, 0.0  ;;  %v252_v50 = vld [vmem:[#allocation5 + $0xe0] sm:$0xff]  ;;  %v78_v55 = vld [vmem:[#allocation2 + $0xb0] sm:$0xff]  ;;  %v423_v59 = vadd.f32 %v255_v54, %v87_v51 }
  0x46   :  { %1076 = vmatprep.subr.mxu1 %v605_v34  ;;  %v604_v45 = vmax.f32 %v436_v35, 0.0  ;;  %v429_v48 = vadd.f32 %v261_v44, %v93_v43  ;;  %869 = vmatprep.subr.mxu0 %v596_v40  ;;  %v420_v53 = vadd.f32 %v252_v50, %v84_v49  ;;  %v246_v56 = vld [vmem:[#allocation5 + $0xb0] sm:$0xff]  ;;  %v589_v57 = vmax.f32 %v421_v47, 0.0  ;;  %v77_v63 = vld [vmem:[#allocation2 + $0xa8] sm:$0xff]  ;;  %v80_v3 = vld [vmem:[#allocation2 + $0xc0] sm:$0xff] }
  0x47   :  { %870 = vmatpush1.msra.mxu0 %v595_v46  ;;  %v414_v60 = vadd.f32 %v246_v56, %v78_v55  ;;  %v86_v61 = vld [vmem:[#allocation2 + $0xf0] sm:$0xff]  ;;  %v245_v2 = vld [vmem:[#allocation5 + $0xa8] sm:$0xff]  ;;  %v248_v4 = vld [vmem:[#allocation5 + $0xc0] sm:$0xff]  ;;  %v591_v5 = vmax.f32 %v423_v59, 0.0 }
  0x48   :  { %1077 = vmatpush1.msra.mxu1 %v604_v45  ;;  %v597_v58 = vmax.f32 %v429_v48, 0.0  ;;  %v254_v62 = vld [vmem:[#allocation5 + $0xf0] sm:$0xff]  ;;  %v588_v0 = vmax.f32 %v420_v53, 0.0  ;;  %871 = vmatprep.subr.mxu0 %v589_v57  ;;  %v413_v7 = vadd.f32 %v245_v2, %v77_v63  ;;  %v416_v8 = vadd.f32 %v248_v4, %v80_v3  ;;  %v71_v9 = vld [vmem:[#allocation2 + $0x78] sm:$0xff]  ;;  %v73_v21 = vld [vmem:[#allocation2 + $0x88] sm:$0xff] }
  0x49   :  { %1078 = vmatprep.subr.mxu1 %v598_v52  ;;  %v422_v1 = vadd.f32 %v254_v62, %v86_v61  ;;  %v582_v6 = vmax.f32 %v414_v60, 0.0  ;;  %v239_v10 = vld [vmem:[#allocation5 + $0x78] sm:$0xff]  ;;  %v70_v15 = vld [vmem:[#allocation2 + $0x70] sm:$0xff]  ;;  %v241_v22 = vld [vmem:[#allocation5 + $0x88] sm:$0xff] }
  0x4a   :  { %1079 = vmatpush1.msra.mxu1 %v597_v58  ;;  %v79_v11 = vld [vmem:[#allocation2 + $0xb8] sm:$0xff]  ;;  %872 = vmatpush1.msra.mxu0 %v588_v0  ;;  %v407_v13 = vadd.f32 %v239_v10, %v71_v9  ;;  %v238_v16 = vld [vmem:[#allocation5 + $0x70] sm:$0xff]  ;;  %v581_v17 = vmax.f32 %v413_v7, 0.0  ;;  %v584_v18 = vmax.f32 %v416_v8, 0.0  ;;  %v64_v23 = vld [vmem:[#allocation2 + $0x40] sm:$0xff]  ;;  %v409_v25 = vadd.f32 %v241_v22, %v73_v21 }
  0x4b   :  { %v590_v12 = vmax.f32 %v422_v1, 0.0  ;;  %v247_v14 = vld [vmem:[#allocation5 + $0xb8] sm:$0xff]  ;;  %1080 = vmatprep.subr.mxu1 %v591_v5  ;;  %873 = vmatprep.subr.mxu0 %v582_v6  ;;  %v406_v20 = vadd.f32 %v238_v16, %v70_v15  ;;  %v232_v26 = vld [vmem:[#allocation5 + $0x40] sm:$0xff]  ;;  %v66_v35 = vld [vmem:[#allocation2 + $0x50] sm:$0xff] }
  0x4c   :  { %v415_v19 = vadd.f32 %v247_v14, %v79_v11  ;;  %v575_v24 = vmax.f32 %v407_v13, 0.0  ;;  %v72_v27 = vld [vmem:[#allocation2 + $0x80] sm:$0xff]  ;;  %874 = vmatpush1.msra.mxu0 %v581_v17  ;;  %v400_v31 = vadd.f32 %v232_v26, %v64_v23  ;;  %v63_v33 = vld [vmem:[#allocation2 + $0x38] sm:$0xff]  ;;  %v577_v36 = vmax.f32 %v409_v25, 0.0  ;;  %v234_v38 = vld [vmem:[#allocation5 + $0x50] sm:$0xff] }
  0x4d   :  { %1081 = vmatpush1.msra.mxu1 %v590_v12  ;;  %v240_v28 = vld [vmem:[#allocation5 + $0x80] sm:$0xff]  ;;  %v574_v30 = vmax.f32 %v406_v20, 0.0  ;;  %v231_v34 = vld [vmem:[#allocation5 + $0x38] sm:$0xff]  ;;  %v57_v39 = vld [vmem:[#allocation2 + $0x8] sm:$0xff]  ;;  %v402_v43 = vadd.f32 %v234_v38, %v66_v35 }
  0x4e   :  { %1082 = vmatprep.subr.mxu1 %v584_v18  ;;  %v583_v29 = vmax.f32 %v415_v19, 0.0  ;;  %v408_v32 = vadd.f32 %v240_v28, %v72_v27  ;;  %875 = vmatprep.subr.mxu0 %v575_v24  ;;  %v399_v37 = vadd.f32 %v231_v34, %v63_v33  ;;  %v225_v40 = vld [vmem:[#allocation5 + $0x8] sm:$0xff]  ;;  %v568_v41 = vmax.f32 %v400_v31, 0.0  ;;  %v56_v47 = vld [vmem:[#allocation2] sm:$0xff]  ;;  %v59_v51 = vld [vmem:[#allocation2 + $0x18] sm:$0xff] }
  0x4f   :  { %876 = vmatpush1.msra.mxu0 %v574_v30  ;;  %v393_v44 = vadd.f32 %v225_v40, %v57_v39  ;;  %v65_v45 = vld [vmem:[#allocation2 + $0x48] sm:$0xff]  ;;  %v224_v50 = vld [vmem:[#allocation5] sm:$0xff]  ;;  %v227_v52 = vld [vmem:[#allocation5 + $0x18] sm:$0xff]  ;;  %v570_v53 = vmax.f32 %v402_v43, 0.0 }
  0x50   :  { %1083 = vmatpush1.msra.mxu1 %v583_v29  ;;  %v576_v42 = vmax.f32 %v408_v32, 0.0  ;;  %v233_v46 = vld [vmem:[#allocation5 + $0x48] sm:$0xff]  ;;  %v567_v48 = vmax.f32 %v399_v37, 0.0  ;;  %877 = vmatprep.subr.mxu0 %v568_v41  ;;  %v392_v55 = vadd.f32 %v224_v50, %v56_v47  ;;  %v395_v56 = vadd.f32 %v227_v52, %v59_v51  ;;  %v218_v57 = vld [vmem:[#allocation2 + $0x510] sm:$0xff]  ;;  %v220_v5 = vld [vmem:[#allocation2 + $0x520] sm:$0xff] }
  0x51   :  { %1084 = vmatprep.subr.mxu1 %v577_v36  ;;  %v401_v49 = vadd.f32 %v233_v46, %v65_v45  ;;  %v561_v54 = vmax.f32 %v393_v44, 0.0  ;;  %v386_v58 = vld [vmem:[#allocation5 + $0x510] sm:$0xff]  ;;  %v217_v63 = vld [vmem:[#allocation2 + $0x508] sm:$0xff]  ;;  %v388_v6 = vld [vmem:[#allocation5 + $0x520] sm:$0xff] }
  0x52   :  { %1085 = vmatpush1.msra.mxu1 %v576_v42  ;;  %v58_v59 = vld [vmem:[#allocation2 + $0x10] sm:$0xff]  ;;  %878 = vmatpush1.msra.mxu0 %v567_v48  ;;  %v554_v61 = vadd.f32 %v386_v58, %v218_v57  ;;  %v385_v0 = vld [vmem:[#allocation5 + $0x508] sm:$0xff]  ;;  %v560_v1 = vmax.f32 %v392_v55, 0.0  ;;  %v563_v2 = vmax.f32 %v395_v56, 0.0  ;;  %v211_v7 = vld [vmem:[#allocation2 + $0x4d8] sm:$0xff]  ;;  %v556_v9 = vadd.f32 %v388_v6, %v220_v5 }
  0x53   :  { %v569_v60 = vmax.f32 %v401_v49, 0.0  ;;  %v226_v62 = vld [vmem:[#allocation5 + $0x10] sm:$0xff]  ;;  %1086 = vmatprep.subr.mxu1 %v570_v53  ;;  %879 = vmatprep.subr.mxu0 %v561_v54  ;;  %v553_v4 = vadd.f32 %v385_v0, %v217_v63  ;;  %v379_v10 = vld [vmem:[#allocation5 + $0x4d8] sm:$0xff]  ;;  %v213_v19 = vld [vmem:[#allocation2 + $0x4e8] sm:$0xff] }
  0x54   :  { %v394_v3 = vadd.f32 %v226_v62, %v58_v59  ;;  %v722_v8 = vmax.f32 %v554_v61, 0.0  ;;  %v219_v11 = vld [vmem:[#allocation2 + $0x518] sm:$0xff]  ;;  %880 = vmatpush1.msra.mxu0 %v560_v1  ;;  %v547_v15 = vadd.f32 %v379_v10, %v211_v7  ;;  %v210_v17 = vld [vmem:[#allocation2 + $0x4d0] sm:$0xff]  ;;  %v724_v20 = vmax.f32 %v556_v9, 0.0  ;;  %v381_v22 = vld [vmem:[#allocation5 + $0x4e8] sm:$0xff] }
  0x55   :  { %1087 = vmatpush1.msra.mxu1 %v569_v60  ;;  %v387_v12 = vld [vmem:[#allocation5 + $0x518] sm:$0xff]  ;;  %v721_v14 = vmax.f32 %v553_v4, 0.0  ;;  %v378_v18 = vld [vmem:[#allocation5 + $0x4d0] sm:$0xff]  ;;  %v204_v23 = vld [vmem:[#allocation2 + $0x4a0] sm:$0xff]  ;;  %v549_v27 = vadd.f32 %v381_v22, %v213_v19 }
  0x56   :  { %1088 = vmatprep.subr.mxu1 %v563_v2  ;;  %v562_v13 = vmax.f32 %v394_v3, 0.0  ;;  %v555_v16 = vadd.f32 %v387_v12, %v219_v11  ;;  %897 = vmatprep.subr.mxu0 %v722_v8  ;;  %v546_v21 = vadd.f32 %v378_v18, %v210_v17  ;;  %v372_v24 = vld [vmem:[#allocation5 + $0x4a0] sm:$0xff]  ;;  %v715_v25 = vmax.f32 %v547_v15, 0.0  ;;  %v203_v31 = vld [vmem:[#allocation2 + $0x498] sm:$0xff]  ;;  %v206_v35 = vld [vmem:[#allocation2 + $0x4b0] sm:$0xff] }
  0x57   :  { %898 = vmatpush2.msra.mxu0 %v721_v14  ;;  %v540_v28 = vadd.f32 %v372_v24, %v204_v23  ;;  %v212_v29 = vld [vmem:[#allocation2 + $0x4e0] sm:$0xff]  ;;  %v371_v34 = vld [vmem:[#allocation5 + $0x498] sm:$0xff]  ;;  %v374_v36 = vld [vmem:[#allocation5 + $0x4b0] sm:$0xff]  ;;  %v717_v37 = vmax.f32 %v549_v27, 0.0 }
  0x58   :  { %1089 = vmatpush1.msra.mxu1 %v562_v13  ;;  %v723_v26 = vmax.f32 %v555_v16, 0.0  ;;  %v380_v30 = vld [vmem:[#allocation5 + $0x4e0] sm:$0xff]  ;;  %v714_v32 = vmax.f32 %v546_v21, 0.0  ;;  %899 = vmatprep.subr.mxu0 %v715_v25  ;;  %v539_v39 = vadd.f32 %v371_v34, %v203_v31  ;;  %v542_v40 = vadd.f32 %v374_v36, %v206_v35  ;;  %v197_v41 = vld [vmem:[#allocation2 + $0x468] sm:$0xff]  ;;  %v199_v53 = vld [vmem:[#allocation2 + $0x478] sm:$0xff] }
  0x59   :  { %1106 = vmatprep.subr.mxu1 %v724_v20  ;;  %v548_v33 = vadd.f32 %v380_v30, %v212_v29  ;;  %v708_v38 = vmax.f32 %v540_v28, 0.0  ;;  %v365_v42 = vld [vmem:[#allocation5 + $0x468] sm:$0xff]  ;;  %v196_v47 = vld [vmem:[#allocation2 + $0x460] sm:$0xff]  ;;  %v367_v54 = vld [vmem:[#allocation5 + $0x478] sm:$0xff] }
  0x5a   :  { %1107 = vmatpush2.msra.mxu1 %v723_v26  ;;  %v205_v43 = vld [vmem:[#allocation2 + $0x4a8] sm:$0xff]  ;;  %900 = vmatpush2.msra.mxu0 %v714_v32  ;;  %v533_v45 = vadd.f32 %v365_v42, %v197_v41  ;;  %v364_v48 = vld [vmem:[#allocation5 + $0x460] sm:$0xff]  ;;  %v707_v49 = vmax.f32 %v539_v39, 0.0  ;;  %v710_v50 = vmax.f32 %v542_v40, 0.0  ;;  %v190_v55 = vld [vmem:[#allocation2 + $0x430] sm:$0xff]  ;;  %v535_v57 = vadd.f32 %v367_v54, %v199_v53 }
  0x5b   :  { %v716_v44 = vmax.f32 %v548_v33, 0.0  ;;  %v373_v46 = vld [vmem:[#allocation5 + $0x4a8] sm:$0xff]  ;;  %1108 = vmatprep.subr.mxu1 %v717_v37  ;;  %901 = vmatprep.subr.mxu0 %v708_v38  ;;  %v532_v52 = vadd.f32 %v364_v48, %v196_v47  ;;  %v358_v58 = vld [vmem:[#allocation5 + $0x430] sm:$0xff]  ;;  %v192_v3 = vld [vmem:[#allocation2 + $0x440] sm:$0xff] }
  0x5c   :  { %v541_v51 = vadd.f32 %v373_v46, %v205_v43  ;;  %v701_v56 = vmax.f32 %v533_v45, 0.0  ;;  %v198_v59 = vld [vmem:[#allocation2 + $0x470] sm:$0xff]  ;;  %902 = vmatpush2.msra.mxu0 %v707_v49  ;;  %v526_v63 = vadd.f32 %v358_v58, %v190_v55  ;;  %v189_v1 = vld [vmem:[#allocation2 + $0x428] sm:$0xff]  ;;  %v703_v4 = vmax.f32 %v535_v57, 0.0  ;;  %v360_v6 = vld [vmem:[#allocation5 + $0x440] sm:$0xff] }
  0x5d   :  { %1109 = vmatpush2.msra.mxu1 %v716_v44  ;;  %v366_v60 = vld [vmem:[#allocation5 + $0x470] sm:$0xff]  ;;  %v700_v62 = vmax.f32 %v532_v52, 0.0  ;;  %v357_v2 = vld [vmem:[#allocation5 + $0x428] sm:$0xff]  ;;  %v183_v7 = vld [vmem:[#allocation2 + $0x3f8] sm:$0xff]  ;;  %v528_v11 = vadd.f32 %v360_v6, %v192_v3 }
  0x5e   :  { %1110 = vmatprep.subr.mxu1 %v710_v50  ;;  %v709_v61 = vmax.f32 %v541_v51, 0.0  ;;  %v534_v0 = vadd.f32 %v366_v60, %v198_v59  ;;  %903 = vmatprep.subr.mxu0 %v701_v56  ;;  %v525_v5 = vadd.f32 %v357_v2, %v189_v1  ;;  %v351_v8 = vld [vmem:[#allocation5 + $0x3f8] sm:$0xff]  ;;  %v694_v9 = vmax.f32 %v526_v63, 0.0  ;;  %v182_v15 = vld [vmem:[#allocation2 + $0x3f0] sm:$0xff]  ;;  %v185_v19 = vld [vmem:[#allocation2 + $0x408] sm:$0xff] }
  0x5f   :  { %904 = vmatpush2.msra.mxu0 %v700_v62  ;;  %v519_v12 = vadd.f32 %v351_v8, %v183_v7  ;;  %v191_v13 = vld [vmem:[#allocation2 + $0x438] sm:$0xff]  ;;  %v350_v18 = vld [vmem:[#allocation5 + $0x3f0] sm:$0xff]  ;;  %v353_v20 = vld [vmem:[#allocation5 + $0x408] sm:$0xff]  ;;  %v696_v21 = vmax.f32 %v528_v11, 0.0 }
  0x60   :  { %1111 = vmatpush2.msra.mxu1 %v709_v61  ;;  %v702_v10 = vmax.f32 %v534_v0, 0.0  ;;  %v359_v14 = vld [vmem:[#allocation5 + $0x438] sm:$0xff]  ;;  %v693_v16 = vmax.f32 %v525_v5, 0.0  ;;  %905 = vmatprep.subr.mxu0 %v694_v9  ;;  %v518_v23 = vadd.f32 %v350_v18, %v182_v15  ;;  %v521_v24 = vadd.f32 %v353_v20, %v185_v19  ;;  %v176_v25 = vld [vmem:[#allocation2 + $0x3c0] sm:$0xff]  ;;  %v178_v37 = vld [vmem:[#allocation2 + $0x3d0] sm:$0xff] }
  0x61   :  { %1112 = vmatprep.subr.mxu1 %v703_v4  ;;  %v527_v17 = vadd.f32 %v359_v14, %v191_v13  ;;  %v687_v22 = vmax.f32 %v519_v12, 0.0  ;;  %v344_v26 = vld [vmem:[#allocation5 + $0x3c0] sm:$0xff]  ;;  %v175_v31 = vld [vmem:[#allocation2 + $0x3b8] sm:$0xff]  ;;  %v346_v38 = vld [vmem:[#allocation5 + $0x3d0] sm:$0xff] }
  0x62   :  { %1113 = vmatpush2.msra.mxu1 %v702_v10  ;;  %v184_v27 = vld [vmem:[#allocation2 + $0x400] sm:$0xff]  ;;  %906 = vmatpush2.msra.mxu0 %v693_v16  ;;  %v512_v29 = vadd.f32 %v344_v26, %v176_v25  ;;  %v343_v32 = vld [vmem:[#allocation5 + $0x3b8] sm:$0xff]  ;;  %v686_v33 = vmax.f32 %v518_v23, 0.0  ;;  %v689_v34 = vmax.f32 %v521_v24, 0.0  ;;  %v169_v39 = vld [vmem:[#allocation2 + $0x388] sm:$0xff]  ;;  %v514_v41 = vadd.f32 %v346_v38, %v178_v37 }
  0x63   :  { %v695_v28 = vmax.f32 %v527_v17, 0.0  ;;  %v352_v30 = vld [vmem:[#allocation5 + $0x400] sm:$0xff]  ;;  %1114 = vmatprep.subr.mxu1 %v696_v21  ;;  %907 = vmatprep.subr.mxu0 %v687_v22  ;;  %v511_v36 = vadd.f32 %v343_v32, %v175_v31  ;;  %v337_v42 = vld [vmem:[#allocation5 + $0x388] sm:$0xff]  ;;  %v171_v54 = vld [vmem:[#allocation2 + $0x398] sm:$0xff] }
  0x64   :  { %v520_v35 = vadd.f32 %v352_v30, %v184_v27  ;;  %v680_v40 = vmax.f32 %v512_v29, 0.0  ;;  %v177_v43 = vld [vmem:[#allocation2 + $0x3c8] sm:$0xff]  ;;  %908 = vmatpush2.msra.mxu0 %v686_v33  ;;  %v505_v47 = vadd.f32 %v337_v42, %v169_v39  ;;  %v168_v49 = vld [vmem:[#allocation2 + $0x380] sm:$0xff]  ;;  %v682_v52 = vmax.f32 %v514_v41, 0.0  ;;  %v339_v55 = vld [vmem:[#allocation5 + $0x398] sm:$0xff] }
  0x65   :  { %1115 = vmatpush2.msra.mxu1 %v695_v28  ;;  %v345_v44 = vld [vmem:[#allocation5 + $0x3c8] sm:$0xff]  ;;  %v679_v46 = vmax.f32 %v511_v36, 0.0  ;;  %v336_v50 = vld [vmem:[#allocation5 + $0x380] sm:$0xff]  ;;  %v507_v59 = vadd.f32 %v339_v55, %v171_v54  ;;  %v170_v60 = vld [vmem:[#allocation2 + $0x390] sm:$0xff]  ;;  %v2050_v29 = vmov 0.0  }
  0x66   :  { %1116 = vmatprep.subr.mxu1 %v689_v34  ;;  %v688_v45 = vmax.f32 %v520_v35, 0.0  ;;  %v513_v48 = vadd.f32 %v345_v44, %v177_v43  ;;  %v729_v51 = vld [vmem:[#allocation7 + $0x8] sm:$0xff]  ;;  %909 = vmatprep.subr.mxu0 %v680_v40  ;;  %v504_v53 = vadd.f32 %v336_v50, %v168_v49  ;;  %v728_v56 = vld [vmem:[#allocation7] sm:$0xff]  ;;  %v673_v57 = vmax.f32 %v505_v47, 0.0  ;;  %v338_v61 = vld [vmem:[#allocation5 + $0x390] sm:$0xff] }
  0x67   :  { %1848 = vmatprep.mubr.msk.f32.mxu0 %vm776_vm0, %v729_v51  ;;  %910 = vmatpush2.msra.mxu0 %v679_v46  ;;  %v166_v62 = vld [vmem:[#allocation2 + $0x370] sm:$0xff]  ;;  %v506_v0 = vadd.f32 %v338_v61, %v170_v60  ;;  %v165_v2 = vld [vmem:[#allocation2 + $0x368] sm:$0xff]  ;;  %v675_v4 = vmax.f32 %v507_v59, 0.0  ;;  %v731_v7 = vld [vmem:[#allocation7 + $0x18] sm:$0xff] }
  0x68   :  { %1117 = vmatpush2.msra.mxu1 %v688_v45  ;;  %v681_v58 = vmax.f32 %v513_v48, 0.0  ;;  %v672_v63 = vmax.f32 %v504_v53, 0.0  ;;  %1872 = vmatprep.mubr.msk.f32.mxu1 %vm776_vm0, %v729_v51  ;;  %v334_v1 = vld [vmem:[#allocation5 + $0x370] sm:$0xff]  ;;  %v333_v3 = vld [vmem:[#allocation5 + $0x368] sm:$0xff]  ;;  %v167_v8 = vld [vmem:[#allocation2 + $0x378] sm:$0xff] }
  0x69   :  { %1118 = vmatprep.subr.mxu1 %v682_v52  ;;  %911 = vmatprep.subr.mxu0 %v673_v57  ;;  %v502_v5 = vadd.f32 %v334_v1, %v166_v62  ;;  %v501_v6 = vadd.f32 %v333_v3, %v165_v2  ;;  %v335_v9 = vld [vmem:[#allocation5 + $0x378] sm:$0xff]  ;;  %v674_v10 = vmax.f32 %v506_v0, 0.0  ;;  %v158_v17 = vld [vmem:[#allocation2 + $0x330] sm:$0xff]  ;;  %v160_v22 = vld [vmem:[#allocation2 + $0x340] sm:$0xff] }
  0x6a   :  { %1119 = vmatpush2.msra.mxu1 %v681_v58  ;;  %912 = vmatpush2.msra.mxu0 %v672_v63  ;;  %v503_v11 = vadd.f32 %v335_v9, %v167_v8  ;;  %v159_v12 = vld [vmem:[#allocation2 + $0x338] sm:$0xff]  ;;  %v326_v18 = vld [vmem:[#allocation5 + $0x330] sm:$0xff]  ;;  %v328_v23 = vld [vmem:[#allocation5 + $0x340] sm:$0xff] }
  0x6b   :  { %v327_v13 = vld [vmem:[#allocation5 + $0x338] sm:$0xff]  ;;  %1120 = vmatprep.subr.mxu1 %v675_v4  ;;  %914 = vmatmul.mubr.f32.vlgmr.msra.gmra.mxu0 %v728_v56  ;;  %v670_v14 = vmax.f32 %v502_v5, 0.0  ;;  %v669_v15 = vmax.f32 %v501_v6, 0.0  ;;  %v2090_v20 = vld [vmem:[#allocation7 + $0x10] sm:$0xff]  ;;  %v494_v21 = vadd.f32 %v326_v18, %v158_v17  ;;  %v496_v25 = vadd.f32 %v328_v23, %v160_v22  ;;  %v152_v26 = vld [vmem:[#allocation2 + $0x300] sm:$0xff] }
  0x6c   :  { %v495_v16 = vadd.f32 %v327_v13, %v159_v12  ;;  %1121 = vmatpush2.msra.mxu1 %v674_v10  ;;  %1849 = vmatprep.mubr.msk.f32.mxu0 %vm776_vm0, %v731_v7  ;;  %v671_v19 = vmax.f32 %v503_v11, 0.0  ;;  %v320_v27 = vld [vmem:[#allocation5 + $0x300] sm:$0xff]  ;;  %v151_v28 = vld [vmem:[#allocation2 + $0x2f8] sm:$0xff]  ;;  %v2093_v31 = vld [vmem:[#allocation7 + $0x28] sm:$0xff] }
  0x6d   :  { %1267 = vmatprep.subr.mxu0 %v670_v14  ;;  %1123 = vmatmul.mubr.f32.vlgmr.msra.gmra.mxu1 %v728_v56  ;;  %v662_v30 = vmax.f32 %v494_v21, 0.0  ;;  %v488_v32 = vadd.f32 %v320_v27, %v152_v26  ;;  %v319_v33 = vld [vmem:[#allocation5 + $0x2f8] sm:$0xff]  ;;  %v153_v34 = vld [vmem:[#allocation2 + $0x308] sm:$0xff]  ;;  %v664_v35 = vmax.f32 %v496_v25, 0.0  ;;  %v2096_v36 = vld [vmem:[#allocation7 + $0x20] sm:$0xff] }
  0x6e   :  { %v663_v24 = vmax.f32 %v495_v16, 0.0  ;;  %1268 = vmatpush1.msra.mxu0 %v669_v15  ;;  %1476 = vmatprep.subr.mxu1 %v2050_v29  ;;  %v487_v37 = vadd.f32 %v319_v33, %v151_v28  ;;  %v321_v38 = vld [vmem:[#allocation5 + $0x308] sm:$0xff]  ;;  %v144_v43 = vld [vmem:[#allocation2 + $0x2c0] sm:$0xff]  ;;  %v146_v48 = vld [vmem:[#allocation2 + $0x2d0] sm:$0xff] }
  0x6f   :  { %1477 = vmatpush1.msra.mxu1 %v671_v19  ;;  %920 = vmatmul.mubr.f32.gmra.mxu0 %v2090_v20  ;;  %v145_v39 = vld [vmem:[#allocation2 + $0x2c8] sm:$0xff]  ;;  %v656_v40 = vmax.f32 %v488_v32, 0.0  ;;  %v489_v41 = vadd.f32 %v321_v38, %v153_v34  ;;  %v312_v44 = vld [vmem:[#allocation5 + $0x2c0] sm:$0xff]  ;;  %v314_v49 = vld [vmem:[#allocation5 + $0x2d0] sm:$0xff] }
  0x70   :  { %1873 = vmatprep.mubr.msk.f32.mxu1 %vm776_vm0, %v731_v7  ;;  %1269 = vmatprep.subr.mxu0 %v663_v24  ;;  %v313_v42 = vld [vmem:[#allocation5 + $0x2c8] sm:$0xff]  ;;  %v655_v45 = vmax.f32 %v487_v37, 0.0  ;;  %v480_v47 = vadd.f32 %v312_v44, %v144_v43  ;;  %v138_v50 = vld [vmem:[#allocation2 + $0x290] sm:$0xff]  ;;  %v2104_v52 = vld [vmem:[#allocation7 + $0x38] sm:$0xff]  ;;  %v482_v54 = vadd.f32 %v314_v49, %v146_v48 }
  0x71   :  { %1129 = vmatmul.mubr.f32.gmra.mxu1 %v2090_v20  ;;  %1270 = vmatpush1.msra.mxu0 %v662_v30  ;;  %v481_v46 = vadd.f32 %v313_v42, %v145_v39  ;;  %v306_v51 = vld [vmem:[#allocation5 + $0x290] sm:$0xff]  ;;  %v657_v53 = vmax.f32 %v489_v41, 0.0  ;;  %v137_v55 = vld [vmem:[#allocation2 + $0x288] sm:$0xff]  ;;  %v139_v60 = vld [vmem:[#allocation2 + $0x298] sm:$0xff] }
  0x72   :  { %1478 = vmatprep.subr.mxu1 %v2050_v29  ;;  %1850 = vmatprep.mubr.msk.f32.mxu0 %vm776_vm0, %v2093_v31  ;;  %v305_v56 = vld [vmem:[#allocation5 + $0x288] sm:$0xff]  ;;  %v2108_v57 = vld [vmem:[#allocation7 + $0x30] sm:$0xff]  ;;  %v474_v59 = vadd.f32 %v306_v51, %v138_v50  ;;  %v307_v61 = vld [vmem:[#allocation5 + $0x298] sm:$0xff]  ;;  %v648_v62 = vmax.f32 %v480_v47, 0.0  ;;  %v650_v5 = vmax.f32 %v482_v54, 0.0 }
  0x73   :  { %1479 = vmatpush1.msra.mxu1 %v664_v35  ;;  %926 = vmatmul.mubr.f32.gmra.mxu0 %v2096_v36  ;;  %v649_v58 = vmax.f32 %v481_v46, 0.0  ;;  %v473_v63 = vadd.f32 %v305_v56, %v137_v55  ;;  %v131_v0 = vld [vmem:[#allocation2 + $0x258] sm:$0xff]  ;;  %v130_v2 = vld [vmem:[#allocation2 + $0x250] sm:$0xff]  ;;  %v2115_v4 = vld [vmem:[#allocation7 + $0x48] sm:$0xff]  ;;  %v475_v6 = vadd.f32 %v307_v61, %v139_v60 }
  0x74   :  { %1874 = vmatprep.mubr.msk.f32.mxu1 %vm776_vm0, %v2093_v31  ;;  %1271 = vmatprep.subr.mxu0 %v656_v40  ;;  %v299_v1 = vld [vmem:[#allocation5 + $0x258] sm:$0xff]  ;;  %v298_v3 = vld [vmem:[#allocation5 + $0x250] sm:$0xff]  ;;  %v2119_v7 = vld [vmem:[#allocation7 + $0x40] sm:$0xff]  ;;  %v642_v8 = vmax.f32 %v474_v59, 0.0 }
  0x75   :  { %1135 = vmatmul.mubr.f32.gmra.mxu1 %v2096_v36  ;;  %1272 = vmatpush1.msra.mxu0 %v655_v45  ;;  %v467_v9 = vadd.f32 %v299_v1, %v131_v0  ;;  %v132_v10 = vld [vmem:[#allocation2 + $0x260] sm:$0xff]  ;;  %v641_v12 = vmax.f32 %v473_v63, 0.0  ;;  %v466_v13 = vadd.f32 %v298_v3, %v130_v2  ;;  %v123_v16 = vld [vmem:[#allocation2 + $0x218] sm:$0xff]  ;;  %v643_v19 = vmax.f32 %v475_v6, 0.0  ;;  %v2130_v22 = vld [vmem:[#allocation7 + $0x50] sm:$0xff] }
  0x76   :  { %1480 = vmatprep.subr.mxu1 %v2050_v29  ;;  %1851 = vmatprep.mubr.msk.f32.mxu0 %vm776_vm0, %v2104_v52  ;;  %v300_v11 = vld [vmem:[#allocation5 + $0x260] sm:$0xff]  ;;  %v291_v17 = vld [vmem:[#allocation5 + $0x218] sm:$0xff]  ;;  %v125_v25 = vld [vmem:[#allocation2 + $0x228] sm:$0xff] }
  0x77   :  { %1481 = vmatpush1.msra.mxu1 %v657_v53  ;;  %932 = vmatmul.mubr.f32.gmra.mxu0 %v2108_v57  ;;  %v124_v14 = vld [vmem:[#allocation2 + $0x220] sm:$0xff]  ;;  %v2126_v18 = vld [vmem:[#allocation7 + $0x58] sm:$0xff]  ;;  %v468_v21 = vadd.f32 %v300_v11, %v132_v10  ;;  %v635_v23 = vmax.f32 %v467_v9, 0.0  ;;  %v293_v26 = vld [vmem:[#allocation5 + $0x228] sm:$0xff]  ;;  %v634_v27 = vmax.f32 %v466_v13, 0.0  ;;  %v459_v28 = vadd.f32 %v291_v17, %v123_v16 }
  0x78   :  { %1875 = vmatprep.mubr.msk.f32.mxu1 %vm776_vm0, %v2104_v52  ;;  %1273 = vmatprep.subr.mxu0 %v649_v58  ;;  %v292_v15 = vld [vmem:[#allocation5 + $0x220] sm:$0xff]  ;;  %v117_v30 = vld [vmem:[#allocation2 + $0x1e8] sm:$0xff]  ;;  %v461_v38 = vadd.f32 %v293_v26, %v125_v25  ;;  %v118_v42 = vld [vmem:[#allocation2 + $0x1f0] sm:$0xff] }
  0x79   :  { %1141 = vmatmul.mubr.f32.gmra.mxu1 %v2108_v57  ;;  %1274 = vmatpush1.msra.mxu0 %v648_v62  ;;  %v460_v24 = vadd.f32 %v292_v15, %v124_v14  ;;  %v285_v32 = vld [vmem:[#allocation5 + $0x1e8] sm:$0xff]  ;;  %v116_v33 = vld [vmem:[#allocation2 + $0x1e0] sm:$0xff]  ;;  %v636_v37 = vmax.f32 %v468_v21, 0.0  ;;  %v286_v43 = vld [vmem:[#allocation5 + $0x1f0] sm:$0xff]  ;;  %v627_v44 = vmax.f32 %v459_v28, 0.0 }
  0x7a   :  { %1482 = vmatprep.subr.mxu1 %v2050_v29  ;;  %1852 = vmatprep.mubr.msk.f32.mxu0 %vm776_vm0, %v2115_v4  ;;  %v284_v34 = vld [vmem:[#allocation5 + $0x1e0] sm:$0xff]  ;;  %v2137_v35 = vld [vmem:[#allocation7 + $0x68] sm:$0xff]  ;;  %v453_v41 = vadd.f32 %v285_v32, %v117_v30  ;;  %v110_v46 = vld [vmem:[#allocation2 + $0x1b0] sm:$0xff]  ;;  %v629_v51 = vmax.f32 %v461_v38, 0.0  ;;  %v454_v53 = vadd.f32 %v286_v43, %v118_v42 }
  0x7b   :  { %1483 = vmatpush1.msra.mxu1 %v650_v5  ;;  %938 = vmatmul.mubr.f32.gmra.mxu0 %v2119_v7  ;;  %v2141_v39 = vld [vmem:[#allocation7 + $0x60] sm:$0xff]  ;;  %v628_v40 = vmax.f32 %v460_v24, 0.0  ;;  %v452_v45 = vadd.f32 %v284_v34, %v116_v33  ;;  %v278_v47 = vld [vmem:[#allocation5 + $0x1b0] sm:$0xff]  ;;  %v109_v48 = vld [vmem:[#allocation2 + $0x1a8] sm:$0xff] }
  0x7c   :  { %1876 = vmatprep.mubr.msk.f32.mxu1 %vm776_vm0, %v2115_v4  ;;  %1275 = vmatprep.subr.mxu0 %v642_v8  ;;  %v277_v49 = vld [vmem:[#allocation5 + $0x1a8] sm:$0xff]  ;;  %v2148_v50 = vld [vmem:[#allocation7 + $0x78] sm:$0xff]  ;;  %v2152_v54 = vld [vmem:[#allocation7 + $0x70] sm:$0xff]  ;;  %v621_v55 = vmax.f32 %v453_v41, 0.0  ;;  %v446_v56 = vadd.f32 %v278_v47, %v110_v46  ;;  %v622_v3 = vmax.f32 %v454_v53, 0.0 }
  0x7d   :  { %1147 = vmatmul.mubr.f32.gmra.mxu1 %v2119_v7  ;;  %1276 = vmatpush1.msra.mxu0 %v641_v12  ;;  %v111_v58 = vld [vmem:[#allocation2 + $0x1b8] sm:$0xff]  ;;  %v620_v60 = vmax.f32 %v452_v45, 0.0  ;;  %v445_v61 = vadd.f32 %v277_v49, %v109_v48  ;;  %v102_v0 = vld [vmem:[#allocation2 + $0x170] sm:$0xff]  ;;  %v2159_v2 = vld [vmem:[#allocation7 + $0x88] sm:$0xff] }
  0x7e   :  { %1484 = vmatprep.subr.mxu1 %v2050_v29  ;;  %1853 = vmatprep.mubr.msk.f32.mxu0 %vm776_vm0, %v2126_v18  ;;  %v279_v59 = vld [vmem:[#allocation5 + $0x1b8] sm:$0xff]  ;;  %v270_v1 = vld [vmem:[#allocation5 + $0x170] sm:$0xff]  ;;  %v2163_v6 = vld [vmem:[#allocation7 + $0x80] sm:$0xff]  ;;  %v614_v8 = vmax.f32 %v446_v56, 0.0 }
  0x7f   :  { %1485 = vmatpush1.msra.mxu1 %v643_v19  ;;  %944 = vmatmul.mubr.f32.gmra.mxu0 %v2130_v22  ;;  %v103_v62 = vld [vmem:[#allocation2 + $0x178] sm:$0xff]  ;;  %v447_v5 = vadd.f32 %v279_v59, %v111_v58  ;;  %v104_v10 = vld [vmem:[#allocation2 + $0x180] sm:$0xff]  ;;  %v613_v12 = vmax.f32 %v445_v61, 0.0  ;;  %v438_v13 = vadd.f32 %v270_v1, %v102_v0  ;;  %v2174_v24 = vld [vmem:[#allocation7 + $0x90] sm:$0xff] }
  0x80   :  { %1877 = vmatprep.mubr.msk.f32.mxu1 %vm776_vm0, %v2126_v18  ;;  %1277 = vmatprep.subr.mxu0 %v635_v23  ;;  %v271_v63 = vld [vmem:[#allocation5 + $0x178] sm:$0xff]  ;;  %v272_v11 = vld [vmem:[#allocation5 + $0x180] sm:$0xff]  ;;  %v265_v28 = vld [vmem:[#allocation5 + $0x148] sm:$0xff] }
  0x81   :  { %1153 = vmatmul.mubr.f32.gmra.mxu1 %v2130_v22  ;;  %1278 = vmatpush1.msra.mxu0 %v634_v27  ;;  %v439_v9 = vadd.f32 %v271_v63, %v103_v62  ;;  %v96_v14 = vld [vmem:[#allocation2 + $0x140] sm:$0xff]  ;;  %v95_v16 = vld [vmem:[#allocation2 + $0x138] sm:$0xff]  ;;  %v615_v21 = vmax.f32 %v447_v5, 0.0  ;;  %v440_v23 = vadd.f32 %v272_v11, %v104_v10  ;;  %v97_v27 = vld [vmem:[#allocation2 + $0x148] sm:$0xff]  ;;  %v606_v30 = vmax.f32 %v438_v13, 0.0 }
  0x82   :  { %1486 = vmatprep.subr.mxu1 %v2050_v29  ;;  %1854 = vmatprep.mubr.msk.f32.mxu0 %vm776_vm0, %v2137_v35  ;;  %v264_v15 = vld [vmem:[#allocation5 + $0x140] sm:$0xff]  ;;  %v263_v17 = vld [vmem:[#allocation5 + $0x138] sm:$0xff]  ;;  %v89_v33 = vld [vmem:[#allocation2 + $0x108] sm:$0xff]  ;;  %v433_v42 = vadd.f32 %v265_v28, %v97_v27 }
  0x83   :  { %1487 = vmatpush1.msra.mxu1 %v636_v37  ;;  %950 = vmatmul.mubr.f32.gmra.mxu0 %v2141_v39  ;;  %v2170_v19 = vld [vmem:[#allocation7 + $0x98] sm:$0xff]  ;;  %v607_v25 = vmax.f32 %v439_v9, 0.0  ;;  %v432_v26 = vadd.f32 %v264_v15, %v96_v14  ;;  %v431_v32 = vadd.f32 %v263_v17, %v95_v16  ;;  %v257_v34 = vld [vmem:[#allocation5 + $0x108] sm:$0xff]  ;;  %v88_v37 = vld [vmem:[#allocation2 + $0x100] sm:$0xff]  ;;  %v608_v41 = vmax.f32 %v440_v23, 0.0 }
  0x84   :  { %1878 = vmatprep.mubr.msk.f32.mxu1 %vm776_vm0, %v2137_v35  ;;  %1279 = vmatprep.subr.mxu0 %v628_v40  ;;  %v256_v38 = vld [vmem:[#allocation5 + $0x100] sm:$0xff]  ;;  %v2181_v40 = vld [vmem:[#allocation7 + $0xa8] sm:$0xff]  ;;  %v425_v45 = vadd.f32 %v257_v34, %v89_v33  ;;  %v90_v46 = vld [vmem:[#allocation2 + $0x110] sm:$0xff]  ;;  %v601_v59 = vmax.f32 %v433_v42, 0.0 }
  0x85   :  { %1159 = vmatmul.mubr.f32.gmra.mxu1 %v2141_v39  ;;  %1280 = vmatpush1.msra.mxu0 %v627_v44  ;;  %v2185_v43 = vld [vmem:[#allocation7 + $0xa0] sm:$0xff]  ;;  %v600_v44 = vmax.f32 %v432_v26, 0.0  ;;  %v258_v47 = vld [vmem:[#allocation5 + $0x110] sm:$0xff]  ;;  %v599_v48 = vmax.f32 %v431_v32, 0.0  ;;  %v424_v49 = vadd.f32 %v256_v38, %v88_v37  ;;  %v249_v56 = vld [vmem:[#allocation5 + $0xc8] sm:$0xff] }
  0x86   :  { %1488 = vmatprep.subr.mxu1 %v2050_v29  ;;  %1855 = vmatprep.mubr.msk.f32.mxu0 %vm776_vm0, %v2148_v50  ;;  %v250_v53 = vld [vmem:[#allocation5 + $0xd0] sm:$0xff]  ;;  %v2192_v58 = vld [vmem:[#allocation7 + $0xb8] sm:$0xff]  ;;  %v593_v62 = vmax.f32 %v425_v45, 0.0  ;;  %v2207_v15 = vld [vmem:[#allocation7 + $0xc0] sm:$0xff] }
  0x87   :  { %1489 = vmatpush1.msra.mxu1 %v629_v51  ;;  %956 = vmatmul.mubr.f32.gmra.mxu0 %v2152_v54  ;;  %v82_v51 = vld [vmem:[#allocation2 + $0xd0] sm:$0xff]  ;;  %v83_v0 = vld [vmem:[#allocation2 + $0xd8] sm:$0xff]  ;;  %v244_v23 = vld [vmem:[#allocation5 + $0xa0] sm:$0xff] }
  0x88   :  { %1879 = vmatprep.mubr.msk.f32.mxu1 %vm776_vm0, %v2148_v50  ;;  %1281 = vmatprep.subr.mxu0 %v621_v55  ;;  %v81_v55 = vld [vmem:[#allocation2 + $0xc8] sm:$0xff]  ;;  %v2196_v61 = vld [vmem:[#allocation7 + $0xb0] sm:$0xff]  ;;  %v418_v63 = vadd.f32 %v250_v53, %v82_v51  ;;  %v251_v1 = vld [vmem:[#allocation5 + $0xd8] sm:$0xff] }
  0x89   :  { %1165 = vmatmul.mubr.f32.gmra.mxu1 %v2152_v54  ;;  %1282 = vmatpush1.msra.mxu0 %v620_v60  ;;  %v426_v60 = vadd.f32 %v258_v47, %v90_v46  ;;  %v417_v5 = vadd.f32 %v249_v56, %v81_v55  ;;  %v243_v9 = vld [vmem:[#allocation5 + $0x98] sm:$0xff]  ;;  %v74_v10 = vld [vmem:[#allocation2 + $0x90] sm:$0xff]  ;;  %v419_v14 = vadd.f32 %v251_v1, %v83_v0  ;;  %v68_v27 = vld [vmem:[#allocation2 + $0x60] sm:$0xff] }
  0x8a   :  { %1490 = vmatprep.subr.mxu1 %v2050_v29  ;;  %1856 = vmatprep.mubr.msk.f32.mxu0 %vm776_vm0, %v2159_v2  ;;  %v242_v11 = vld [vmem:[#allocation5 + $0x90] sm:$0xff]  ;;  %v586_v16 = vmax.f32 %v418_v63, 0.0  ;;  %v236_v28 = vld [vmem:[#allocation5 + $0x60] sm:$0xff]  ;;  %v235_v32 = vld [vmem:[#allocation5 + $0x58] sm:$0xff] }
  0x8b   :  { %1491 = vmatpush1.msra.mxu1 %v622_v3  ;;  %962 = vmatmul.mubr.f32.gmra.mxu0 %v2163_v6  ;;  %v592_v3 = vmax.f32 %v424_v49, 0.0  ;;  %v594_v13 = vmax.f32 %v426_v60, 0.0  ;;  %v410_v26 = vadd.f32 %v242_v11, %v74_v10  ;;  %v2214_v33 = vld [vmem:[#allocation7 + $0xd8] sm:$0xff]  ;;  %v587_v34 = vmax.f32 %v419_v14, 0.0  ;;  %v2218_v38 = vld [vmem:[#allocation7 + $0xd0] sm:$0xff]  ;;  %v237_v45 = vld [vmem:[#allocation5 + $0x68] sm:$0xff] }
  0x8c   :  { %1880 = vmatprep.mubr.msk.f32.mxu1 %vm776_vm0, %v2159_v2  ;;  %1283 = vmatprep.subr.mxu0 %v614_v8  ;;  %v75_v8 = vld [vmem:[#allocation2 + $0x98] sm:$0xff]  ;;  %v404_v42 = vadd.f32 %v236_v28, %v68_v27  ;;  %v229_v49 = vld [vmem:[#allocation5 + $0x28] sm:$0xff]  ;;  %v60_v51 = vld [vmem:[#allocation2 + $0x20] sm:$0xff] }
  0x8d   :  { %1171 = vmatmul.mubr.f32.gmra.mxu1 %v2163_v6  ;;  %1284 = vmatpush1.msra.mxu0 %v613_v12  ;;  %v2203_v12 = vld [vmem:[#allocation7 + $0xc8] sm:$0xff]  ;;  %v411_v17 = vadd.f32 %v243_v9, %v75_v8  ;;  %v578_v46 = vmax.f32 %v410_v26, 0.0  ;;  %v228_v53 = vld [vmem:[#allocation5 + $0x20] sm:$0xff]  ;;  %v62_v0 = vld [vmem:[#allocation2 + $0x30] sm:$0xff] }
  0x8e   :  { %1492 = vmatprep.subr.mxu1 %v2050_v29  ;;  %1857 = vmatprep.mubr.msk.f32.mxu0 %vm776_vm0, %v2170_v19  ;;  %v2225_v55 = vld [vmem:[#allocation7 + $0xe8] sm:$0xff]  ;;  %v2229_v60 = vld [vmem:[#allocation7 + $0xe0] sm:$0xff]  ;;  %v230_v1 = vld [vmem:[#allocation5 + $0x30] sm:$0xff] }
  0x8f   :  { %1493 = vmatpush1.msra.mxu1 %v615_v21  ;;  %968 = vmatmul.mubr.f32.gmra.mxu0 %v2174_v24  ;;  %v76_v21 = vld [vmem:[#allocation2 + $0xa0] sm:$0xff]  ;;  %v222_v8 = vld [vmem:[#allocation2 + $0x530] sm:$0xff]  ;;  %v221_v10 = vld [vmem:[#allocation2 + $0x528] sm:$0xff] }
  0x90   :  { %1881 = vmatprep.mubr.msk.f32.mxu1 %vm776_vm0, %v2170_v19  ;;  %1285 = vmatprep.subr.mxu0 %v607_v25  ;;  %v585_v25 = vmax.f32 %v417_v5, 0.0  ;;  %v412_v37 = vadd.f32 %v244_v23, %v76_v21  ;;  %v396_v5 = vadd.f32 %v228_v53, %v60_v51  ;;  %v390_v9 = vld [vmem:[#allocation5 + $0x530] sm:$0xff]  ;;  %v389_v11 = vld [vmem:[#allocation5 + $0x528] sm:$0xff]  ;;  %v391_v26 = vld [vmem:[#allocation5 + $0x538] sm:$0xff] }
  0x91   :  { %1177 = vmatmul.mubr.f32.gmra.mxu1 %v2174_v24  ;;  %1286 = vmatpush1.msra.mxu0 %v606_v30  ;;  %v67_v30 = vld [vmem:[#allocation2 + $0x58] sm:$0xff]  ;;  %v558_v23 = vadd.f32 %v390_v9, %v222_v8  ;;  %v557_v28 = vadd.f32 %v389_v11, %v221_v10  ;;  %v209_v10 = vld [vmem:[#allocation2 + $0x4c8] sm:$0xff] }
  0x92   :  { %1494 = vmatprep.subr.mxu1 %v2050_v29  ;;  %1858 = vmatprep.mubr.msk.f32.mxu0 %vm776_vm0, %v2181_v40  ;;  %v403_v47 = vadd.f32 %v235_v32, %v67_v30  ;;  %v580_v56 = vmax.f32 %v412_v37, 0.0  ;;  %v564_v27 = vmax.f32 %v396_v5, 0.0  ;;  %v215_v30 = vld [vmem:[#allocation2 + $0x4f8] sm:$0xff]  ;;  %v382_v37 = vld [vmem:[#allocation5 + $0x4f0] sm:$0xff]  ;;  %v377_v11 = vld [vmem:[#allocation5 + $0x4c8] sm:$0xff] }
  0x93   :  { %1495 = vmatpush1.msra.mxu1 %v608_v41  ;;  %974 = vmatmul.mubr.f32.gmra.mxu0 %v2185_v43  ;;  %v579_v41 = vmax.f32 %v411_v17, 0.0  ;;  %v2240_v17 = vld [vmem:[#allocation7 + $0xf0] sm:$0xff]  ;;  %v383_v32 = vld [vmem:[#allocation5 + $0x4f8] sm:$0xff]  ;;  %v725_v51 = vmax.f32 %v557_v28, 0.0 }
  0x94   :  { %1882 = vmatprep.mubr.msk.f32.mxu1 %vm776_vm0, %v2181_v40  ;;  %1287 = vmatprep.subr.mxu0 %v600_v44  ;;  %v69_v44 = vld [vmem:[#allocation2 + $0x68] sm:$0xff]  ;;  %v2262_v5 = vld [vmem:[#allocation7 + $0x110] sm:$0xff] }
  0x95   :  { %1183 = vmatmul.mubr.f32.gmra.mxu1 %v2185_v43  ;;  %1288 = vmatpush1.msra.mxu0 %v599_v48  ;;  %v61_v48 = vld [vmem:[#allocation2 + $0x28] sm:$0xff] }
  0x96   :  { %1496 = vmatprep.subr.mxu1 %v2050_v29  ;;  %1859 = vmatprep.mubr.msk.f32.mxu0 %vm776_vm0, %v2192_v58  ;;  %v397_v63 = vadd.f32 %v229_v49, %v61_v48  ;;  %v216_v48 = vld [vmem:[#allocation2 + $0x500] sm:$0xff] }
  0x97   :  { %1497 = vmatpush1.msra.mxu1 %v601_v59  ;;  %980 = vmatmul.mubr.f32.gmra.mxu0 %v2196_v61  ;;  %v405_v59 = vadd.f32 %v237_v45, %v69_v44  ;;  %v2251_v45 = vld [vmem:[#allocation7 + $0x100] sm:$0xff] }
  0x98   :  { %1883 = vmatprep.mubr.msk.f32.mxu1 %vm776_vm0, %v2192_v58  ;;  %1289 = vmatprep.subr.mxu0 %v593_v62  ;;  %v572_v62 = vmax.f32 %v404_v42, 0.0  ;;  %v565_v21 = vmax.f32 %v397_v63, 0.0  ;;  %v384_v49 = vld [vmem:[#allocation5 + $0x500] sm:$0xff]  ;;  %v375_v63 = vld [vmem:[#allocation5 + $0x4b8] sm:$0xff] }
  0x99   :  { %1189 = vmatmul.mubr.f32.gmra.mxu1 %v2196_v61  ;;  %1290 = vmatpush1.msra.mxu0 %v592_v3  ;;  %v571_v3 = vmax.f32 %v403_v47, 0.0  ;;  %v573_v14 = vmax.f32 %v405_v59, 0.0  ;;  %v551_v47 = vadd.f32 %v383_v32, %v215_v30  ;;  %v376_v59 = vld [vmem:[#allocation5 + $0x4c0] sm:$0xff]  ;;  %v545_v30 = vadd.f32 %v377_v11, %v209_v10 }
  0x9a   :  { %1498 = vmatprep.subr.mxu1 %v2050_v29  ;;  %1860 = vmatprep.mubr.msk.f32.mxu0 %vm776_vm0, %v2203_v12  ;;  %v2273_v32 = vld [vmem:[#allocation7 + $0x120] sm:$0xff] }
  0x9b   :  { %1499 = vmatpush1.msra.mxu1 %v594_v13  ;;  %986 = vmatmul.mubr.f32.gmra.mxu0 %v2207_v15  ;;  %v2236_v13 = vld [vmem:[#allocation7 + $0xf8] sm:$0xff]  ;;  %v719_v8 = vmax.f32 %v551_v47, 0.0 }
  0x9c   :  { %1884 = vmatprep.mubr.msk.f32.mxu1 %vm776_vm0, %v2203_v12  ;;  %1291 = vmatprep.subr.mxu0 %v586_v16  ;;  %v398_v16 = vadd.f32 %v230_v1, %v62_v0  ;;  %v2258_v0 = vld [vmem:[#allocation7 + $0x118] sm:$0xff] }
  0x9d   :  { %1195 = vmatmul.mubr.f32.gmra.mxu1 %v2207_v15  ;;  %1292 = vmatpush1.msra.mxu0 %v585_v25  ;;  %v223_v25 = vld [vmem:[#allocation2 + $0x538] sm:$0xff] }
  0x9e   :  { %1500 = vmatprep.subr.mxu1 %v2050_v29  ;;  %1861 = vmatprep.mubr.msk.f32.mxu0 %vm776_vm0, %v2214_v33  ;;  %v566_v42 = vmax.f32 %v398_v16, 0.0  ;;  %v559_v44 = vadd.f32 %v391_v26, %v223_v25  ;;  %v200_v25 = vld [vmem:[#allocation2 + $0x480] sm:$0xff] }
  0x9f   :  { %1501 = vmatpush1.msra.mxu1 %v587_v34  ;;  %992 = vmatmul.mubr.f32.gmra.mxu0 %v2218_v38  ;;  %v214_v34 = vld [vmem:[#allocation2 + $0x4f0] sm:$0xff]  ;;  %v368_v26 = vld [vmem:[#allocation5 + $0x480] sm:$0xff] }
  0xa0   :  { %1885 = vmatprep.mubr.msk.f32.mxu1 %vm776_vm0, %v2214_v33  ;;  %1293 = vmatprep.subr.mxu0 %v579_v41  ;;  %v2247_v41 = vld [vmem:[#allocation7 + $0x108] sm:$0xff]  ;;  %v550_v53 = vadd.f32 %v382_v37, %v214_v34  ;;  %v727_v1 = vmax.f32 %v559_v44, 0.0  ;;  %v370_v44 = vld [vmem:[#allocation5 + $0x490] sm:$0xff]  ;;  %v536_v47 = vadd.f32 %v368_v26, %v200_v25 }
  0xa1   :  { %1201 = vmatmul.mubr.f32.gmra.mxu1 %v2218_v38  ;;  %1294 = vmatpush1.msra.mxu0 %v578_v46  ;;  %v726_v46 = vmax.f32 %v558_v23, 0.0  ;;  %v369_v23 = vld [vmem:[#allocation5 + $0x488] sm:$0xff] }
  0xa2   :  { %1502 = vmatprep.subr.mxu1 %v2050_v29  ;;  %1862 = vmatprep.mubr.msk.f32.mxu0 %vm776_vm0, %v2225_v55  ;;  %v704_v10 = vmax.f32 %v536_v47, 0.0  ;;  %v2291_v25 = vld [vmem:[#allocation7 + $0x148] sm:$0xff] }
  0xa3   :  { %1503 = vmatpush1.msra.mxu1 %v580_v56  ;;  %998 = vmatmul.mubr.f32.gmra.mxu0 %v2229_v60  ;;  %v208_v56 = vld [vmem:[#allocation2 + $0x4c0] sm:$0xff] }
  0xa4   :  { %1886 = vmatprep.mubr.msk.f32.mxu1 %vm776_vm0, %v2225_v55  ;;  %1295 = vmatprep.subr.mxu0 %v572_v62  ;;  %v207_v62 = vld [vmem:[#allocation2 + $0x4b8] sm:$0xff]  ;;  %v544_v9 = vadd.f32 %v376_v59, %v208_v56  ;;  %v713_v59 = vmax.f32 %v545_v30, 0.0  ;;  %v2295_v30 = vld [vmem:[#allocation7 + $0x140] sm:$0xff] }
  0xa5   :  { %1207 = vmatmul.mubr.f32.gmra.mxu1 %v2229_v60  ;;  %1296 = vmatpush1.msra.mxu0 %v571_v3  ;;  %v552_v3 = vadd.f32 %v384_v49, %v216_v48  ;;  %v543_v16 = vadd.f32 %v375_v63, %v207_v62  ;;  %v194_v48 = vld [vmem:[#allocation2 + $0x450] sm:$0xff]  ;;  %v2280_v56 = vld [vmem:[#allocation7 + $0x138] sm:$0xff] }
  0xa6   :  { %1504 = vmatprep.subr.mxu1 %v2050_v29  ;;  %1863 = vmatprep.mubr.msk.f32.mxu0 %vm776_vm0, %v2236_v13  ;;  %v712_v34 = vmax.f32 %v544_v9, 0.0  ;;  %v362_v49 = vld [vmem:[#allocation5 + $0x450] sm:$0xff]  ;;  %v363_v9 = vld [vmem:[#allocation5 + $0x458] sm:$0xff] }
  0xa7   :  { %1505 = vmatpush1.msra.mxu1 %v573_v14  ;;  %1004 = vmatmul.mubr.f32.gmra.mxu0 %v2240_v17  ;;  %v718_v14 = vmax.f32 %v550_v53, 0.0  ;;  %v720_v28 = vmax.f32 %v552_v3, 0.0  ;;  %v361_v53 = vld [vmem:[#allocation5 + $0x448] sm:$0xff]  ;;  %v2284_v63 = vld [vmem:[#allocation7 + $0x130] sm:$0xff]  ;;  %v530_v3 = vadd.f32 %v362_v49, %v194_v48  ;;  %v180_v48 = vld [vmem:[#allocation2 + $0x3e0] sm:$0xff] }
  0xa8   :  { %1887 = vmatprep.mubr.msk.f32.mxu1 %vm776_vm0, %v2236_v13  ;;  %1297 = vmatprep.subr.mxu0 %v565_v21  ;;  %v201_v21 = vld [vmem:[#allocation2 + $0x488] sm:$0xff]  ;;  %v348_v49 = vld [vmem:[#allocation5 + $0x3e0] sm:$0xff] }
  0xa9   :  { %1213 = vmatmul.mubr.f32.gmra.mxu1 %v2240_v17  ;;  %1298 = vmatpush1.msra.mxu0 %v564_v27  ;;  %v2269_v27 = vld [vmem:[#allocation7 + $0x128] sm:$0xff]  ;;  %v537_v37 = vadd.f32 %v369_v23, %v201_v21  ;;  %v186_v21 = vld [vmem:[#allocation2 + $0x410] sm:$0xff] }
  0xaa   :  { %1506 = vmatprep.subr.mxu1 %v2050_v29  ;;  %1864 = vmatprep.mubr.msk.f32.mxu0 %vm776_vm0, %v2247_v41  ;;  %v354_v23 = vld [vmem:[#allocation5 + $0x410] sm:$0xff] }
  0xab   :  { %1507 = vmatpush1.msra.mxu1 %v566_v42  ;;  %1010 = vmatmul.mubr.f32.gmra.mxu0 %v2251_v45  ;;  %v202_v42 = vld [vmem:[#allocation2 + $0x490] sm:$0xff]  ;;  %v522_v47 = vadd.f32 %v354_v23, %v186_v21  ;;  %v173_v21 = vld [vmem:[#allocation2 + $0x3a8] sm:$0xff] }
  0xac   :  { %1888 = vmatprep.mubr.msk.f32.mxu1 %vm776_vm0, %v2247_v41  ;;  %1315 = vmatprep.subr.mxu0 %v726_v46  ;;  %v711_v46 = vmax.f32 %v543_v16, 0.0  ;;  %v538_v62 = vadd.f32 %v370_v44, %v202_v42  ;;  %v355_v16 = vld [vmem:[#allocation5 + $0x418] sm:$0xff]  ;;  %v188_v42 = vld [vmem:[#allocation2 + $0x420] sm:$0xff]  ;;  %v341_v23 = vld [vmem:[#allocation5 + $0x3a8] sm:$0xff] }
  0xad   :  { %1219 = vmatmul.mubr.f32.gmra.mxu1 %v2251_v45  ;;  %1316 = vmatpush2.msra.mxu0 %v725_v51  ;;  %v193_v51 = vld [vmem:[#allocation2 + $0x448] sm:$0xff]  ;;  %v356_v44 = vld [vmem:[#allocation5 + $0x420] sm:$0xff] }
  0xae   :  { %1524 = vmatprep.subr.mxu1 %v2050_v29  ;;  %1865 = vmatprep.mubr.msk.f32.mxu0 %vm776_vm0, %v2258_v0  ;;  %v529_v11 = vadd.f32 %v361_v53, %v193_v51  ;;  %v706_v26 = vmax.f32 %v538_v62, 0.0  ;;  %v179_v51 = vld [vmem:[#allocation2 + $0x3d8] sm:$0xff] }
  0xaf   :  { %1525 = vmatpush2.msra.mxu1 %v727_v1  ;;  %1016 = vmatmul.mubr.f32.gmra.mxu0 %v2262_v5  ;;  %v705_v1 = vmax.f32 %v537_v37, 0.0  ;;  %v347_v53 = vld [vmem:[#allocation5 + $0x3d8] sm:$0xff] }
  0xb0   :  { %1889 = vmatprep.mubr.msk.f32.mxu1 %vm776_vm0, %v2258_v0  ;;  %1317 = vmatprep.subr.mxu0 %v719_v8  ;;  %v195_v8 = vld [vmem:[#allocation2 + $0x458] sm:$0xff] }
  0xb1   :  { %1225 = vmatmul.mubr.f32.gmra.mxu1 %v2262_v5  ;;  %1318 = vmatpush2.msra.mxu0 %v718_v14  ;;  %v187_v14 = vld [vmem:[#allocation2 + $0x418] sm:$0xff] }
  0xb2   :  { %1526 = vmatprep.subr.mxu1 %v2050_v29  ;;  %1866 = vmatprep.mubr.msk.f32.mxu0 %vm776_vm0, %v2269_v27  ;;  %v523_v37 = vadd.f32 %v355_v16, %v187_v14  ;;  %v690_v14 = vmax.f32 %v522_v47, 0.0  ;;  %v515_v16 = vadd.f32 %v347_v53, %v179_v51  ;;  %v509_v47 = vadd.f32 %v341_v23, %v173_v21  ;;  %v1954_v21 = vld [vmem:[#allocation7] sm:$0xff]  ;;  %v1955_v23 = vld [vmem:[#allocation7 + $0x18] sm:$0xff] }
  0xb3   :  { %1527 = vmatpush2.msra.mxu1 %v720_v28  ;;  %1022 = vmatmul.mubr.f32.gmra.mxu0 %v2273_v32  ;;  %v531_v28 = vadd.f32 %v363_v9, %v195_v8  ;;  %v516_v9 = vadd.f32 %v348_v49, %v180_v48  ;;  %v174_v48 = vld [vmem:[#allocation2 + $0x3b0] sm:$0xff] }
  0xb4   :  { %1890 = vmatprep.mubr.msk.f32.mxu1 %vm776_vm0, %v2269_v27  ;;  %1319 = vmatprep.subr.mxu0 %v712_v34  ;;  %v698_v34 = vmax.f32 %v530_v3, 0.0  ;;  %v2306_v3 = vld [vmem:[#allocation7 + $0x150] sm:$0xff]  ;;  %v691_v8 = vmax.f32 %v523_v37, 0.0  ;;  %v683_v51 = vmax.f32 %v515_v16, 0.0  ;;  %v1953_v16 = vld [vmem:[#allocation7 + $0x8] sm:$0xff] }
  0xb5   :  { %1231 = vmatmul.mubr.f32.gmra.mxu1 %v2273_v32  ;;  %1320 = vmatpush2.msra.mxu0 %v711_v46  ;;  %v697_v46 = vmax.f32 %v529_v11, 0.0  ;;  %v699_v62 = vmax.f32 %v531_v28, 0.0  ;;  %v349_v11 = vld [vmem:[#allocation5 + $0x3e8] sm:$0xff]  ;;  %v340_v28 = vld [vmem:[#allocation5 + $0x3a0] sm:$0xff]  ;;  %v342_v49 = vld [vmem:[#allocation5 + $0x3b0] sm:$0xff] }
  0xb6   :  { %1528 = vmatprep.subr.mxu1 %v2050_v29  ;;  %1867 = vmatprep.mubr.msk.f32.mxu0 %vm776_vm0, %v2280_v56 }
  0xb7   :  { %1529 = vmatpush2.msra.mxu1 %v713_v59  ;;  %1028 = vmatmul.mubr.f32.gmra.mxu0 %v2284_v63  ;;  %v2302_v59 = vld [vmem:[#allocation7 + $0x158] sm:$0xff] }
  0xb8   :  { %1891 = vmatprep.mubr.msk.f32.mxu1 %vm776_vm0, %v2280_v56  ;;  %1321 = vmatprep.subr.mxu0 %v705_v1  ;;  %v524_v1 = vadd.f32 %v356_v44, %v188_v42  ;;  %v2317_v44 = vld [vmem:[#allocation7 + $0x160] sm:$0xff] }
  0xb9   :  { %1237 = vmatmul.mubr.f32.gmra.mxu1 %v2284_v63  ;;  %1322 = vmatpush2.msra.mxu0 %v704_v10  ;;  %v181_v10 = vld [vmem:[#allocation2 + $0x3e8] sm:$0xff] }
  0xba   :  { %1530 = vmatprep.subr.mxu1 %v2050_v29  ;;  %1868 = vmatprep.mubr.msk.f32.mxu0 %vm776_vm0, %v2291_v25  ;;  %v692_v37 = vmax.f32 %v524_v1, 0.0  ;;  %v517_v42 = vadd.f32 %v349_v11, %v181_v10  ;;  %v677_v10 = vmax.f32 %v509_v47, 0.0 }
  0xbb   :  { %1531 = vmatpush2.msra.mxu1 %v706_v26  ;;  %1034 = vmatmul.mubr.f32.gmra.mxu0 %v2295_v30  ;;  %v172_v26 = vld [vmem:[#allocation2 + $0x3a0] sm:$0xff] }
  0xbc   :  { %1892 = vmatprep.mubr.msk.f32.mxu1 %vm776_vm0, %v2291_v25  ;;  %1323 = vmatprep.subr.mxu0 %v698_v34  ;;  %v2313_v34 = vld [vmem:[#allocation7 + $0x168] sm:$0xff]  ;;  %v508_v53 = vadd.f32 %v340_v28, %v172_v26  ;;  %v685_v1 = vmax.f32 %v517_v42, 0.0 }
  0xbd   :  { %1243 = vmatmul.mubr.f32.gmra.mxu1 %v2295_v30  ;;  %1324 = vmatpush2.msra.mxu0 %v697_v46  ;;  %v684_v46 = vmax.f32 %v516_v9, 0.0  ;;  %v2328_v9 = vld [vmem:[#allocation7 + $0x170] sm:$0xff] }
  0xbe   :  { %1532 = vmatprep.subr.mxu1 %v2050_v29  ;;  %1869 = vmatprep.mubr.msk.f32.mxu0 %vm776_vm0, %v2302_v59  ;;  %v676_v11 = vmax.f32 %v508_v53, 0.0 }
  0xbf   :  { %1533 = vmatpush2.msra.mxu1 %v699_v62  ;;  %1040 = vmatmul.mubr.f32.gmra.mxu0 %v2306_v3  ;;  %v2324_v62 = vld [vmem:[#allocation7 + $0x178] sm:$0xff] }
  0xc0   :  { %1893 = vmatprep.mubr.msk.f32.mxu1 %vm776_vm0, %v2302_v59  ;;  %1325 = vmatprep.subr.mxu0 %v691_v8  ;;  %v510_v8 = vadd.f32 %v342_v49, %v174_v48 }
  0xc1   :  { %1249 = vmatmul.mubr.f32.gmra.mxu1 %v2306_v3  ;;  %1326 = vmatpush2.msra.mxu0 %v690_v14 }
  0xc2   :  { %1534 = vmatprep.subr.mxu1 %v2050_v29  ;;  %1870 = vmatprep.mubr.msk.f32.mxu0 %vm776_vm0, %v2313_v34  ;;  %v678_v14 = vmax.f32 %v510_v8, 0.0 }
  0xc3   :  { %1535 = vmatpush2.msra.mxu1 %v692_v37  ;;  %1046 = vmatmul.mubr.f32.gmra.mxu0 %v2317_v44 }
  0xc4   :  { %1894 = vmatprep.mubr.msk.f32.mxu1 %vm776_vm0, %v2313_v34  ;;  %1327 = vmatprep.subr.mxu0 %v684_v46 }
  0xc5   :  { %1255 = vmatmul.mubr.f32.gmra.mxu1 %v2317_v44  ;;  %1328 = vmatpush2.msra.mxu0 %v683_v51 }
  0xc6   :  { %1536 = vmatprep.subr.mxu1 %v2050_v29  ;;  %1871 = vmatprep.mubr.msk.f32.mxu0 %vm776_vm0, %v2324_v62 }
  0xc7   :  { %1537 = vmatpush2.msra.mxu1 %v685_v1  ;;  %1052 = vmatmul.mubr.f32.gmra.mxu0 %v2328_v9 }
  0xc8   :  { %1895 = vmatprep.mubr.msk.f32.mxu1 %vm776_vm0, %v2324_v62  ;;  %1329 = vmatprep.subr.mxu0 %v677_v10 }
  0xc9   :  { %1261 = vmatmul.mubr.f32.gmra.mxu1 %v2328_v9  ;;  %1330 = vmatpush2.msra.mxu0 %v676_v11 }
  0xca   :  { %1538 = vmatprep.subr.mxu1 %v2050_v29  ;;  %1896 = vmatprep.mubr.msk.f32.mxu0 %vm776_vm0, %v1953_v16  ;;  %v1956_v29 = vld [vmem:[#allocation7 + $0x10] sm:$0xff] }
  0xcb   :  { %1539 = vmatpush2.msra.mxu1 %v678_v14  ;;  %1332 = vmatmul.mubr.f32.vlgmr.msra.gmra.mxu0 %v1954_v21 }
  0xcc   :  { %1920 = vmatprep.mubr.msk.f32.mxu1 %vm776_vm0, %v1953_v16  ;;  %1897 = vmatprep.mubr.msk.f32.mxu0 %vm776_vm0, %v1955_v23 }
  0xcd   :  { %1541 = vmatmul.mubr.f32.vlgmr.msra.gmra.mxu1 %v1954_v21 }
  0xce   :  { %1921 = vmatprep.mubr.msk.f32.mxu1 %vm776_vm0, %v1955_v23 }
  0xcf   :  { %1338 = vmatmul.mubr.f32.gmra.mxu0 %v2090_v20 }
  0xd0   :  { %1898 = vmatprep.mubr.msk.f32.mxu0 %vm776_vm0, %v2093_v31 }
  0xd1   :  { %1546 = vmatmul.mubr.f32.gmra.mxu1 %v1956_v29 }
  0xd2   :  { %1922 = vmatprep.mubr.msk.f32.mxu1 %vm776_vm0, %v2093_v31 }
  0xd3   :  { %1344 = vmatmul.mubr.f32.gmra.mxu0 %v2096_v36 }
  0xd4   :  { %1899 = vmatprep.mubr.msk.f32.mxu0 %vm776_vm0, %v2104_v52 }
  0xd5   :  { %1551 = vmatmul.mubr.f32.gmra.mxu1 %v2096_v36 }
  0xd6   :  { %1923 = vmatprep.mubr.msk.f32.mxu1 %vm776_vm0, %v2104_v52 }
  0xd7   :  { %1350 = vmatmul.mubr.f32.gmra.mxu0 %v2108_v57 }
  0xd8   :  { %1900 = vmatprep.mubr.msk.f32.mxu0 %vm776_vm0, %v2115_v4 }
  0xd9   :  { %1556 = vmatmul.mubr.f32.gmra.mxu1 %v2108_v57 }
  0xda   :  { %1924 = vmatprep.mubr.msk.f32.mxu1 %vm776_vm0, %v2115_v4 }
  0xdb   :  { %1356 = vmatmul.mubr.f32.gmra.mxu0 %v2119_v7 }
  0xdc   :  { %1901 = vmatprep.mubr.msk.f32.mxu0 %vm776_vm0, %v2126_v18 }
  0xdd   :  { %1561 = vmatmul.mubr.f32.gmra.mxu1 %v2119_v7 }
  0xde   :  { %1925 = vmatprep.mubr.msk.f32.mxu1 %vm776_vm0, %v2126_v18 }
  0xdf   :  { %1362 = vmatmul.mubr.f32.gmra.mxu0 %v2130_v22 }
  0xe0   :  { %1902 = vmatprep.mubr.msk.f32.mxu0 %vm776_vm0, %v2137_v35 }
  0xe1   :  { %1566 = vmatmul.mubr.f32.gmra.mxu1 %v2130_v22 }
  0xe2   :  { %1926 = vmatprep.mubr.msk.f32.mxu1 %vm776_vm0, %v2137_v35 }
  0xe3   :  { %1368 = vmatmul.mubr.f32.gmra.mxu0 %v2141_v39 }
  0xe4   :  { %1903 = vmatprep.mubr.msk.f32.mxu0 %vm776_vm0, %v2148_v50 }
  0xe5   :  { %1571 = vmatmul.mubr.f32.gmra.mxu1 %v2141_v39 }
  0xe6   :  { %1927 = vmatprep.mubr.msk.f32.mxu1 %vm776_vm0, %v2148_v50 }
  0xe7   :  { %1374 = vmatmul.mubr.f32.gmra.mxu0 %v2152_v54 }
  0xe8   :  { %1904 = vmatprep.mubr.msk.f32.mxu0 %vm776_vm0, %v2159_v2 }
  0xe9   :  { %1576 = vmatmul.mubr.f32.gmra.mxu1 %v2152_v54 }
  0xea   :  { %1928 = vmatprep.mubr.msk.f32.mxu1 %vm776_vm0, %v2159_v2 }
  0xeb   :  { %1380 = vmatmul.mubr.f32.gmra.mxu0 %v2163_v6 }
  0xec   :  { %1905 = vmatprep.mubr.msk.f32.mxu0 %vm776_vm0, %v2170_v19 }
  0xed   :  { %1581 = vmatmul.mubr.f32.gmra.mxu1 %v2163_v6 }
  0xee   :  { %1929 = vmatprep.mubr.msk.f32.mxu1 %vm776_vm0, %v2170_v19 }
  0xef   :  { %1386 = vmatmul.mubr.f32.gmra.mxu0 %v2174_v24 }
  0xf0   :  { %1906 = vmatprep.mubr.msk.f32.mxu0 %vm776_vm0, %v2181_v40 }
  0xf1   :  { %1586 = vmatmul.mubr.f32.gmra.mxu1 %v2174_v24 }
  0xf2   :  { %1930 = vmatprep.mubr.msk.f32.mxu1 %vm776_vm0, %v2181_v40 }
  0xf3   :  { %1392 = vmatmul.mubr.f32.gmra.mxu0 %v2185_v43 }
  0xf4   :  { %1907 = vmatprep.mubr.msk.f32.mxu0 %vm776_vm0, %v2192_v58 }
  0xf5   :  { %1591 = vmatmul.mubr.f32.gmra.mxu1 %v2185_v43 }
  0xf6   :  { %1931 = vmatprep.mubr.msk.f32.mxu1 %vm776_vm0, %v2192_v58 }
  0xf7   :  { %1398 = vmatmul.mubr.f32.gmra.mxu0 %v2196_v61 }
  0xf8   :  { %1908 = vmatprep.mubr.msk.f32.mxu0 %vm776_vm0, %v2203_v12 }
  0xf9   :  { %1596 = vmatmul.mubr.f32.gmra.mxu1 %v2196_v61 }
  0xfa   :  { %1932 = vmatprep.mubr.msk.f32.mxu1 %vm776_vm0, %v2203_v12 }
  0xfb   :  { %1404 = vmatmul.mubr.f32.gmra.mxu0 %v2207_v15 }
  0xfc   :  { %1909 = vmatprep.mubr.msk.f32.mxu0 %vm776_vm0, %v2214_v33 }
  0xfd   :  { %1601 = vmatmul.mubr.f32.gmra.mxu1 %v2207_v15 }
  0xfe   :  { %1933 = vmatprep.mubr.msk.f32.mxu1 %vm776_vm0, %v2214_v33 }
  0xff   :  { %1410 = vmatmul.mubr.f32.gmra.mxu0 %v2218_v38 }
 0x100   :  { %1910 = vmatprep.mubr.msk.f32.mxu0 %vm776_vm0, %v2225_v55 }
 0x101   :  { %1606 = vmatmul.mubr.f32.gmra.mxu1 %v2218_v38 }
 0x102   :  { %1934 = vmatprep.mubr.msk.f32.mxu1 %vm776_vm0, %v2225_v55 }
 0x103   :  { %1416 = vmatmul.mubr.f32.gmra.mxu0 %v2229_v60 }
 0x104   :  { %1911 = vmatprep.mubr.msk.f32.mxu0 %vm776_vm0, %v2236_v13 }
 0x105   :  { %1611 = vmatmul.mubr.f32.gmra.mxu1 %v2229_v60 }
 0x106   :  { %1935 = vmatprep.mubr.msk.f32.mxu1 %vm776_vm0, %v2236_v13 }
 0x107   :  { %1422 = vmatmul.mubr.f32.gmra.mxu0 %v2240_v17 }
 0x108   :  { %1912 = vmatprep.mubr.msk.f32.mxu0 %vm776_vm0, %v2247_v41 }
 0x109   :  { %1616 = vmatmul.mubr.f32.gmra.mxu1 %v2240_v17 }
 0x10a   :  { %1936 = vmatprep.mubr.msk.f32.mxu1 %vm776_vm0, %v2247_v41 }
 0x10b   :  { %1428 = vmatmul.mubr.f32.gmra.mxu0 %v2251_v45 }
 0x10c   :  { %1913 = vmatprep.mubr.msk.f32.mxu0 %vm776_vm0, %v2258_v0 }
 0x10d   :  { %1621 = vmatmul.mubr.f32.gmra.mxu1 %v2251_v45 }
 0x10e   :  { %1937 = vmatprep.mubr.msk.f32.mxu1 %vm776_vm0, %v2258_v0 }
 0x10f   :  { %1434 = vmatmul.mubr.f32.gmra.mxu0 %v2262_v5 }
 0x110   :  { %1914 = vmatprep.mubr.msk.f32.mxu0 %vm776_vm0, %v2269_v27 }
 0x111   :  { %1626 = vmatmul.mubr.f32.gmra.mxu1 %v2262_v5 }
 0x112   :  { %1938 = vmatprep.mubr.msk.f32.mxu1 %vm776_vm0, %v2269_v27 }
 0x113   :  { %1440 = vmatmul.mubr.f32.gmra.mxu0 %v2273_v32 }
 0x114   :  { %1915 = vmatprep.mubr.msk.f32.mxu0 %vm776_vm0, %v2280_v56 }
 0x115   :  { %1631 = vmatmul.mubr.f32.gmra.mxu1 %v2273_v32 }
 0x116   :  { %1939 = vmatprep.mubr.msk.f32.mxu1 %vm776_vm0, %v2280_v56 }
 0x117   :  { %1446 = vmatmul.mubr.f32.gmra.mxu0 %v2284_v63 }
 0x118   :  { %1916 = vmatprep.mubr.msk.f32.mxu0 %vm776_vm0, %v2291_v25 }
 0x119   :  { %1636 = vmatmul.mubr.f32.gmra.mxu1 %v2284_v63 }
 0x11a   :  { %1940 = vmatprep.mubr.msk.f32.mxu1 %vm776_vm0, %v2291_v25 }
 0x11b   :  { %1452 = vmatmul.mubr.f32.gmra.mxu0 %v2295_v30 }
 0x11c   :  { %1917 = vmatprep.mubr.msk.f32.mxu0 %vm776_vm0, %v2302_v59 }
 0x11d   :  { %1641 = vmatmul.mubr.f32.gmra.mxu1 %v2295_v30 }
 0x11e   :  { %1941 = vmatprep.mubr.msk.f32.mxu1 %vm776_vm0, %v2302_v59 }
 0x11f   :  { %1458 = vmatmul.mubr.f32.gmra.mxu0 %v2306_v3 }
 0x120   :  { %1918 = vmatprep.mubr.msk.f32.mxu0 %vm776_vm0, %v2313_v34 }
 0x121   :  { %1646 = vmatmul.mubr.f32.gmra.mxu1 %v2306_v3 }
 0x122   :  { %1942 = vmatprep.mubr.msk.f32.mxu1 %vm776_vm0, %v2313_v34 }
 0x123   :  { %1464 = vmatmul.mubr.f32.gmra.mxu0 %v2317_v44 }
 0x124   :  { %1919 = vmatprep.mubr.msk.f32.mxu0 %vm776_vm0, %v2324_v62 }
 0x125   :  { %1651 = vmatmul.mubr.f32.gmra.mxu1 %v2317_v44 }
 0x126   :  { %1943 = vmatprep.mubr.msk.f32.mxu1 %vm776_vm0, %v2324_v62 }
 0x127   :  { %1470 = vmatmul.mubr.f32.gmra.mxu0 %v2328_v9 }
 0x129   :  { %1656 = vmatmul.mubr.f32.gmra.mxu1 %v2328_v9 }
 0x12b   :  { %v915_v20 = vpop.f32.mrf.mxu0 }
 0x12c   :  { %1661 = vst [vmem:[#allocation8] sm:$0xff] %v915_v20 }
 0x12d   :  { %v1124_v31 = vpop.f32.mrf.mxu1  ;;  %v917_v36 = vpop.f32.mrf.mxu0 }
 0x12e   :  { %1663 = vst [vmem:[#allocation8 + $0x10] sm:$0xff] %v1124_v31  ;;  %1662 = vst [vmem:[#allocation8 + $0x8] sm:$0xff] %v917_v36 }
 0x12f   :  { %v1126_v52 = vpop.f32.mrf.mxu1  ;;  %v921_v57 = vpop.f32.mrf.mxu0 }
 0x130   :  { %1664 = vst [vmem:[#allocation8 + $0x18] sm:$0xff] %v1126_v52  ;;  %1669 = vst [vmem:[#allocation8 + $0x38] sm:$0xff] %v921_v57 }
 0x131   :  { %v1130_v4 = vpop.f32.mrf.mxu1  ;;  %v923_v7 = vpop.f32.mrf.mxu0 }
 0x132   :  { %1671 = vst [vmem:[#allocation8 + $0x48] sm:$0xff] %v1130_v4  ;;  %1670 = vst [vmem:[#allocation8 + $0x40] sm:$0xff] %v923_v7 }
 0x133   :  { %v1132_v18 = vpop.f32.mrf.mxu1  ;;  %v927_v22 = vpop.f32.mrf.mxu0 }
 0x134   :  { %1672 = vst [vmem:[#allocation8 + $0x50] sm:$0xff] %v1132_v18  ;;  %1676 = vst [vmem:[#allocation8 + $0x70] sm:$0xff] %v927_v22 }
 0x135   :  { %v1136_v35 = vpop.f32.mrf.mxu1  ;;  %v929_v39 = vpop.f32.mrf.mxu0 }
 0x136   :  { %1678 = vst [vmem:[#allocation8 + $0x80] sm:$0xff] %v1136_v35  ;;  %1677 = vst [vmem:[#allocation8 + $0x78] sm:$0xff] %v929_v39 }
 0x137   :  { %v1138_v50 = vpop.f32.mrf.mxu1  ;;  %v933_v54 = vpop.f32.mrf.mxu0 }
 0x138   :  { %1679 = vst [vmem:[#allocation8 + $0x88] sm:$0xff] %v1138_v50  ;;  %1683 = vst [vmem:[#allocation8 + $0xa8] sm:$0xff] %v933_v54 }
 0x139   :  { %v1142_v2 = vpop.f32.mrf.mxu1  ;;  %v935_v6 = vpop.f32.mrf.mxu0 }
 0x13a   :  { %1685 = vst [vmem:[#allocation8 + $0xb8] sm:$0xff] %v1142_v2  ;;  %1684 = vst [vmem:[#allocation8 + $0xb0] sm:$0xff] %v935_v6 }
 0x13b   :  { %v1144_v19 = vpop.f32.mrf.mxu1  ;;  %v939_v24 = vpop.f32.mrf.mxu0 }
 0x13c   :  { %1686 = vst [vmem:[#allocation8 + $0xc0] sm:$0xff] %v1144_v19  ;;  %1690 = vst [vmem:[#allocation8 + $0xe0] sm:$0xff] %v939_v24 }
 0x13d   :  { %v1148_v40 = vpop.f32.mrf.mxu1  ;;  %v941_v43 = vpop.f32.mrf.mxu0 }
 0x13e   :  { %1692 = vst [vmem:[#allocation8 + $0xf0] sm:$0xff] %v1148_v40  ;;  %1691 = vst [vmem:[#allocation8 + $0xe8] sm:$0xff] %v941_v43 }
 0x13f   :  { %v1150_v58 = vpop.f32.mrf.mxu1  ;;  %v945_v61 = vpop.f32.mrf.mxu0 }
 0x140   :  { %1693 = vst [vmem:[#allocation8 + $0xf8] sm:$0xff] %v1150_v58  ;;  %1697 = vst [vmem:[#allocation8 + $0x118] sm:$0xff] %v945_v61 }
 0x141   :  { %v1154_v12 = vpop.f32.mrf.mxu1  ;;  %v947_v15 = vpop.f32.mrf.mxu0 }
 0x142   :  { %1699 = vst [vmem:[#allocation8 + $0x128] sm:$0xff] %v1154_v12  ;;  %1698 = vst [vmem:[#allocation8 + $0x120] sm:$0xff] %v947_v15 }
 0x143   :  { %v1156_v33 = vpop.f32.mrf.mxu1  ;;  %v951_v38 = vpop.f32.mrf.mxu0 }
 0x144   :  { %1700 = vst [vmem:[#allocation8 + $0x130] sm:$0xff] %v1156_v33  ;;  %1704 = vst [vmem:[#allocation8 + $0x150] sm:$0xff] %v951_v38 }
 0x145   :  { %v1160_v55 = vpop.f32.mrf.mxu1  ;;  %v953_v60 = vpop.f32.mrf.mxu0 }
 0x146   :  { %1706 = vst [vmem:[#allocation8 + $0x160] sm:$0xff] %v1160_v55  ;;  %1705 = vst [vmem:[#allocation8 + $0x158] sm:$0xff] %v953_v60 }
 0x147   :  { %v1162_v13 = vpop.f32.mrf.mxu1  ;;  %v957_v17 = vpop.f32.mrf.mxu0 }
 0x148   :  { %1707 = vst [vmem:[#allocation8 + $0x168] sm:$0xff] %v1162_v13  ;;  %1711 = vst [vmem:[#allocation8 + $0x188] sm:$0xff] %v957_v17 }
 0x149   :  { %v1166_v41 = vpop.f32.mrf.mxu1  ;;  %v959_v45 = vpop.f32.mrf.mxu0 }
 0x14a   :  { %1713 = vst [vmem:[#allocation8 + $0x198] sm:$0xff] %v1166_v41  ;;  %1712 = vst [vmem:[#allocation8 + $0x190] sm:$0xff] %v959_v45 }
 0x14b   :  { %v1168_v0 = vpop.f32.mrf.mxu1  ;;  %v963_v5 = vpop.f32.mrf.mxu0 }
 0x14c   :  { %1714 = vst [vmem:[#allocation8 + $0x1a0] sm:$0xff] %v1168_v0  ;;  %1718 = vst [vmem:[#allocation8 + $0x1c0] sm:$0xff] %v963_v5 }
 0x14d   :  { %v1172_v27 = vpop.f32.mrf.mxu1  ;;  %v965_v32 = vpop.f32.mrf.mxu0 }
 0x14e   :  { %1720 = vst [vmem:[#allocation8 + $0x1d0] sm:$0xff] %v1172_v27  ;;  %1719 = vst [vmem:[#allocation8 + $0x1c8] sm:$0xff] %v965_v32 }
 0x14f   :  { %v1174_v56 = vpop.f32.mrf.mxu1  ;;  %v969_v63 = vpop.f32.mrf.mxu0 }
 0x150   :  { %1721 = vst [vmem:[#allocation8 + $0x1d8] sm:$0xff] %v1174_v56  ;;  %1725 = vst [vmem:[#allocation8 + $0x1f8] sm:$0xff] %v969_v63 }
 0x151   :  { %v1178_v25 = vpop.f32.mrf.mxu1  ;;  %v971_v30 = vpop.f32.mrf.mxu0 }
 0x152   :  { %1727 = vst [vmem:[#allocation8 + $0x208] sm:$0xff] %v1178_v25  ;;  %1726 = vst [vmem:[#allocation8 + $0x200] sm:$0xff] %v971_v30 }
 0x153   :  { %v1180_v59 = vpop.f32.mrf.mxu1  ;;  %v975_v3 = vpop.f32.mrf.mxu0 }
 0x154   :  { %1728 = vst [vmem:[#allocation8 + $0x210] sm:$0xff] %v1180_v59  ;;  %1732 = vst [vmem:[#allocation8 + $0x230] sm:$0xff] %v975_v3 }
 0x155   :  { %v1184_v26 = vpop.f32.mrf.mxu1  ;;  %v977_v28 = vpop.f32.mrf.mxu0 }
 0x156   :  { %1734 = vst [vmem:[#allocation8 + $0x240] sm:$0xff] %v1184_v26  ;;  %1733 = vst [vmem:[#allocation8 + $0x238] sm:$0xff] %v977_v28 }
 0x157   :  { %v1186_v34 = vpop.f32.mrf.mxu1  ;;  %v981_v37 = vpop.f32.mrf.mxu0 }
 0x158   :  { %1735 = vst [vmem:[#allocation8 + $0x248] sm:$0xff] %v1186_v34  ;;  %1739 = vst [vmem:[#allocation8 + $0x268] sm:$0xff] %v981_v37 }
 0x159   :  { %v1190_v42 = vpop.f32.mrf.mxu1  ;;  %v983_v44 = vpop.f32.mrf.mxu0 }
 0x15a   :  { %1741 = vst [vmem:[#allocation8 + $0x278] sm:$0xff] %v1190_v42  ;;  %1740 = vst [vmem:[#allocation8 + $0x270] sm:$0xff] %v983_v44 }
 0x15b   :  { %v1192_v46 = vpop.f32.mrf.mxu1  ;;  %v987_v47 = vpop.f32.mrf.mxu0 }
 0x15c   :  { %1742 = vst [vmem:[#allocation8 + $0x280] sm:$0xff] %v1192_v46  ;;  %1746 = vst [vmem:[#allocation8 + $0x2a0] sm:$0xff] %v987_v47 }
 0x15d   :  { %v1196_v48 = vpop.f32.mrf.mxu1  ;;  %v989_v49 = vpop.f32.mrf.mxu0 }
 0x15e   :  { %1748 = vst [vmem:[#allocation8 + $0x2b0] sm:$0xff] %v1196_v48  ;;  %1747 = vst [vmem:[#allocation8 + $0x2a8] sm:$0xff] %v989_v49 }
 0x15f   :  { %v1198_v51 = vpop.f32.mrf.mxu1  ;;  %v993_v53 = vpop.f32.mrf.mxu0 }
 0x160   :  { %1749 = vst [vmem:[#allocation8 + $0x2b8] sm:$0xff] %v1198_v51  ;;  %1753 = vst [vmem:[#allocation8 + $0x2d8] sm:$0xff] %v993_v53 }
 0x161   :  { %v1202_v62 = vpop.f32.mrf.mxu1  ;;  %v995_v1 = vpop.f32.mrf.mxu0 }
 0x162   :  { %1755 = vst [vmem:[#allocation8 + $0x2e8] sm:$0xff] %v1202_v62  ;;  %1754 = vst [vmem:[#allocation8 + $0x2e0] sm:$0xff] %v995_v1 }
 0x163   :  { %v1204_v8 = vpop.f32.mrf.mxu1  ;;  %v999_v9 = vpop.f32.mrf.mxu0 }
 0x164   :  { %1756 = vst [vmem:[#allocation8 + $0x2f0] sm:$0xff] %v1204_v8  ;;  %1760 = vst [vmem:[#allocation8 + $0x310] sm:$0xff] %v999_v9 }
 0x165   :  { %v1208_v10 = vpop.f32.mrf.mxu1  ;;  %v1001_v11 = vpop.f32.mrf.mxu0 }
 0x166   :  { %1762 = vst [vmem:[#allocation8 + $0x320] sm:$0xff] %v1208_v10  ;;  %1761 = vst [vmem:[#allocation8 + $0x318] sm:$0xff] %v1001_v11 }
 0x167   :  { %v1210_v14 = vpop.f32.mrf.mxu1  ;;  %v1005_v16 = vpop.f32.mrf.mxu0 }
 0x168   :  { %1763 = vst [vmem:[#allocation8 + $0x328] sm:$0xff] %v1210_v14  ;;  %1767 = vst [vmem:[#allocation8 + $0x348] sm:$0xff] %v1005_v16 }
 0x169   :  { %v1214_v21 = vpop.f32.mrf.mxu1  ;;  %v1007_v23 = vpop.f32.mrf.mxu0 }
 0x16a   :  { %1769 = vst [vmem:[#allocation8 + $0x358] sm:$0xff] %v1214_v21  ;;  %1768 = vst [vmem:[#allocation8 + $0x350] sm:$0xff] %v1007_v23 }
 0x16b   :  { %v1216_v29 = vpop.f32.mrf.mxu1  ;;  %v1011_v20 = vpop.f32.mrf.mxu0 }
 0x16c   :  { %1770 = vst [vmem:[#allocation8 + $0x360] sm:$0xff] %v1216_v29  ;;  %1774 = vst [vmem:[#allocation8 + $0x380] sm:$0xff] %v1011_v20 }
 0x16d   :  { %v1220_v31 = vpop.f32.mrf.mxu1  ;;  %v1013_v36 = vpop.f32.mrf.mxu0 }
 0x16e   :  { %1776 = vst [vmem:[#allocation8 + $0x390] sm:$0xff] %v1220_v31  ;;  %1775 = vst [vmem:[#allocation8 + $0x388] sm:$0xff] %v1013_v36 }
 0x16f   :  { %v1222_v52 = vpop.f32.mrf.mxu1  ;;  %v1017_v57 = vpop.f32.mrf.mxu0 }
 0x170   :  { %1777 = vst [vmem:[#allocation8 + $0x398] sm:$0xff] %v1222_v52  ;;  %1781 = vst [vmem:[#allocation8 + $0x3b8] sm:$0xff] %v1017_v57 }
 0x171   :  { %v1226_v4 = vpop.f32.mrf.mxu1  ;;  %v1019_v7 = vpop.f32.mrf.mxu0 }
 0x172   :  { %1783 = vst [vmem:[#allocation8 + $0x3c8] sm:$0xff] %v1226_v4  ;;  %1782 = vst [vmem:[#allocation8 + $0x3c0] sm:$0xff] %v1019_v7 }
 0x173   :  { %v1228_v18 = vpop.f32.mrf.mxu1  ;;  %v1023_v22 = vpop.f32.mrf.mxu0 }
 0x174   :  { %1784 = vst [vmem:[#allocation8 + $0x3d0] sm:$0xff] %v1228_v18  ;;  %1788 = vst [vmem:[#allocation8 + $0x3f0] sm:$0xff] %v1023_v22 }
 0x175   :  { %v1232_v35 = vpop.f32.mrf.mxu1  ;;  %v1025_v39 = vpop.f32.mrf.mxu0 }
 0x176   :  { %1790 = vst [vmem:[#allocation8 + $0x400] sm:$0xff] %v1232_v35  ;;  %1789 = vst [vmem:[#allocation8 + $0x3f8] sm:$0xff] %v1025_v39 }
 0x177   :  { %v1234_v50 = vpop.f32.mrf.mxu1  ;;  %v1029_v54 = vpop.f32.mrf.mxu0 }
 0x178   :  { %1791 = vst [vmem:[#allocation8 + $0x408] sm:$0xff] %v1234_v50  ;;  %1795 = vst [vmem:[#allocation8 + $0x428] sm:$0xff] %v1029_v54 }
 0x179   :  { %v1238_v2 = vpop.f32.mrf.mxu1  ;;  %v1031_v6 = vpop.f32.mrf.mxu0 }
 0x17a   :  { %1797 = vst [vmem:[#allocation8 + $0x438] sm:$0xff] %v1238_v2  ;;  %1796 = vst [vmem:[#allocation8 + $0x430] sm:$0xff] %v1031_v6 }
 0x17b   :  { %v1240_v19 = vpop.f32.mrf.mxu1  ;;  %v1035_v24 = vpop.f32.mrf.mxu0 }
 0x17c   :  { %1798 = vst [vmem:[#allocation8 + $0x440] sm:$0xff] %v1240_v19  ;;  %1802 = vst [vmem:[#allocation8 + $0x460] sm:$0xff] %v1035_v24 }
 0x17d   :  { %v1244_v40 = vpop.f32.mrf.mxu1  ;;  %v1037_v43 = vpop.f32.mrf.mxu0 }
 0x17e   :  { %1804 = vst [vmem:[#allocation8 + $0x470] sm:$0xff] %v1244_v40  ;;  %1803 = vst [vmem:[#allocation8 + $0x468] sm:$0xff] %v1037_v43 }
 0x17f   :  { %v1246_v58 = vpop.f32.mrf.mxu1  ;;  %v1041_v61 = vpop.f32.mrf.mxu0 }
 0x180   :  { %1805 = vst [vmem:[#allocation8 + $0x478] sm:$0xff] %v1246_v58  ;;  %1809 = vst [vmem:[#allocation8 + $0x498] sm:$0xff] %v1041_v61 }
 0x181   :  { %v1250_v12 = vpop.f32.mrf.mxu1  ;;  %v1043_v15 = vpop.f32.mrf.mxu0 }
 0x182   :  { %1811 = vst [vmem:[#allocation8 + $0x4a8] sm:$0xff] %v1250_v12  ;;  %1810 = vst [vmem:[#allocation8 + $0x4a0] sm:$0xff] %v1043_v15 }
 0x183   :  { %v1252_v33 = vpop.f32.mrf.mxu1  ;;  %v1047_v38 = vpop.f32.mrf.mxu0 }
 0x184   :  { %1812 = vst [vmem:[#allocation8 + $0x4b0] sm:$0xff] %v1252_v33  ;;  %1816 = vst [vmem:[#allocation8 + $0x4d0] sm:$0xff] %v1047_v38 }
 0x185   :  { %v1256_v55 = vpop.f32.mrf.mxu1  ;;  %v1049_v60 = vpop.f32.mrf.mxu0 }
 0x186   :  { %1818 = vst [vmem:[#allocation8 + $0x4e0] sm:$0xff] %v1256_v55  ;;  %1817 = vst [vmem:[#allocation8 + $0x4d8] sm:$0xff] %v1049_v60 }
 0x187   :  { %v1258_v13 = vpop.f32.mrf.mxu1  ;;  %v1053_v17 = vpop.f32.mrf.mxu0 }
 0x188   :  { %1819 = vst [vmem:[#allocation8 + $0x4e8] sm:$0xff] %v1258_v13  ;;  %1823 = vst [vmem:[#allocation8 + $0x508] sm:$0xff] %v1053_v17 }
 0x189   :  { %v1262_v41 = vpop.f32.mrf.mxu1  ;;  %v1055_v45 = vpop.f32.mrf.mxu0 }
 0x18a   :  { %1825 = vst [vmem:[#allocation8 + $0x518] sm:$0xff] %v1262_v41  ;;  %1824 = vst [vmem:[#allocation8 + $0x510] sm:$0xff] %v1055_v45 }
 0x18b   :  { %v1264_v0 = vpop.f32.mrf.mxu1  ;;  %v1333_v5 = vpop.f32.mrf.mxu0 }
 0x18c   :  { %1826 = vst [vmem:[#allocation8 + $0x520] sm:$0xff] %v1264_v0  ;;  %1665 = vst [vmem:[#allocation8 + $0x20] sm:$0xff] %v1333_v5 }
 0x18d   :  { %v1542_v27 = vpop.f32.mrf.mxu1  ;;  %v1335_v32 = vpop.f32.mrf.mxu0 }
 0x18e   :  { %1668 = vst.msk [vmem:[#allocation8 + $0x30] sm:$0xff] %vm1667_vm1, %v1542_v27  ;;  %1666 = vst [vmem:[#allocation8 + $0x28] sm:$0xff] %v1335_v32 }
 0x18f   :  { %v1544_v56 = vpop.f32.mrf.mxu1  ;;  %v1339_v63 = vpop.f32.mrf.mxu0 }
 0x190   :  { %1673 = vst [vmem:[#allocation8 + $0x58] sm:$0xff] %v1339_v63 }
 0x191   :  { %v1547_v25 = vpop.f32.mrf.mxu1  ;;  %v1341_v30 = vpop.f32.mrf.mxu0 }
 0x192   :  { %1675 = vst.msk [vmem:[#allocation8 + $0x68] sm:$0xff] %vm1667_vm1, %v1547_v25  ;;  %1674 = vst [vmem:[#allocation8 + $0x60] sm:$0xff] %v1341_v30 }
 0x193   :  { %v1549_v59 = vpop.f32.mrf.mxu1  ;;  %v1345_v3 = vpop.f32.mrf.mxu0 }
 0x194   :  { %1680 = vst [vmem:[#allocation8 + $0x90] sm:$0xff] %v1345_v3 }
 0x195   :  { %v1552_v26 = vpop.f32.mrf.mxu1  ;;  %v1347_v28 = vpop.f32.mrf.mxu0 }
 0x196   :  { %1682 = vst.msk [vmem:[#allocation8 + $0xa0] sm:$0xff] %vm1667_vm1, %v1552_v26  ;;  %1681 = vst [vmem:[#allocation8 + $0x98] sm:$0xff] %v1347_v28 }
 0x197   :  { %v1554_v34 = vpop.f32.mrf.mxu1  ;;  %v1351_v37 = vpop.f32.mrf.mxu0 }
 0x198   :  { %1687 = vst [vmem:[#allocation8 + $0xc8] sm:$0xff] %v1351_v37 }
 0x199   :  { %v1557_v42 = vpop.f32.mrf.mxu1  ;;  %v1353_v44 = vpop.f32.mrf.mxu0 }
 0x19a   :  { %1689 = vst.msk [vmem:[#allocation8 + $0xd8] sm:$0xff] %vm1667_vm1, %v1557_v42  ;;  %1688 = vst [vmem:[#allocation8 + $0xd0] sm:$0xff] %v1353_v44 }
 0x19b   :  { %v1559_v46 = vpop.f32.mrf.mxu1  ;;  %v1357_v47 = vpop.f32.mrf.mxu0 }
 0x19c   :  { %1694 = vst [vmem:[#allocation8 + $0x100] sm:$0xff] %v1357_v47 }
 0x19d   :  { %v1562_v48 = vpop.f32.mrf.mxu1  ;;  %v1359_v49 = vpop.f32.mrf.mxu0 }
 0x19e   :  { %1696 = vst.msk [vmem:[#allocation8 + $0x110] sm:$0xff] %vm1667_vm1, %v1562_v48  ;;  %1695 = vst [vmem:[#allocation8 + $0x108] sm:$0xff] %v1359_v49 }
 0x19f   :  { %v1564_v51 = vpop.f32.mrf.mxu1  ;;  %v1363_v53 = vpop.f32.mrf.mxu0 }
 0x1a0   :  { %1701 = vst [vmem:[#allocation8 + $0x138] sm:$0xff] %v1363_v53 }
 0x1a1   :  { %v1567_v62 = vpop.f32.mrf.mxu1  ;;  %v1365_v1 = vpop.f32.mrf.mxu0 }
 0x1a2   :  { %1703 = vst.msk [vmem:[#allocation8 + $0x148] sm:$0xff] %vm1667_vm1, %v1567_v62  ;;  %1702 = vst [vmem:[#allocation8 + $0x140] sm:$0xff] %v1365_v1 }
 0x1a3   :  { %v1569_v8 = vpop.f32.mrf.mxu1  ;;  %v1369_v9 = vpop.f32.mrf.mxu0 }
 0x1a4   :  { %1708 = vst [vmem:[#allocation8 + $0x170] sm:$0xff] %v1369_v9 }
 0x1a5   :  { %v1572_v10 = vpop.f32.mrf.mxu1  ;;  %v1371_v11 = vpop.f32.mrf.mxu0 }
 0x1a6   :  { %1710 = vst.msk [vmem:[#allocation8 + $0x180] sm:$0xff] %vm1667_vm1, %v1572_v10  ;;  %1709 = vst [vmem:[#allocation8 + $0x178] sm:$0xff] %v1371_v11 }
 0x1a7   :  { %v1574_v14 = vpop.f32.mrf.mxu1  ;;  %v1375_v16 = vpop.f32.mrf.mxu0 }
 0x1a8   :  { %1715 = vst [vmem:[#allocation8 + $0x1a8] sm:$0xff] %v1375_v16 }
 0x1a9   :  { %v1577_v21 = vpop.f32.mrf.mxu1  ;;  %v1377_v23 = vpop.f32.mrf.mxu0 }
 0x1aa   :  { %1717 = vst.msk [vmem:[#allocation8 + $0x1b8] sm:$0xff] %vm1667_vm1, %v1577_v21  ;;  %1716 = vst [vmem:[#allocation8 + $0x1b0] sm:$0xff] %v1377_v23 }
 0x1ab   :  { %v1579_v29 = vpop.f32.mrf.mxu1  ;;  %v1381_v20 = vpop.f32.mrf.mxu0 }
 0x1ac   :  { %1722 = vst [vmem:[#allocation8 + $0x1e0] sm:$0xff] %v1381_v20 }
 0x1ad   :  { %v1582_v31 = vpop.f32.mrf.mxu1  ;;  %v1383_v36 = vpop.f32.mrf.mxu0 }
 0x1ae   :  { %1724 = vst.msk [vmem:[#allocation8 + $0x1f0] sm:$0xff] %vm1667_vm1, %v1582_v31  ;;  %1723 = vst [vmem:[#allocation8 + $0x1e8] sm:$0xff] %v1383_v36 }
 0x1af   :  { %v1584_v52 = vpop.f32.mrf.mxu1  ;;  %v1387_v57 = vpop.f32.mrf.mxu0 }
 0x1b0   :  { %1729 = vst [vmem:[#allocation8 + $0x218] sm:$0xff] %v1387_v57 }
 0x1b1   :  { %v1587_v4 = vpop.f32.mrf.mxu1  ;;  %v1389_v7 = vpop.f32.mrf.mxu0 }
 0x1b2   :  { %1731 = vst.msk [vmem:[#allocation8 + $0x228] sm:$0xff] %vm1667_vm1, %v1587_v4  ;;  %1730 = vst [vmem:[#allocation8 + $0x220] sm:$0xff] %v1389_v7 }
 0x1b3   :  { %v1589_v18 = vpop.f32.mrf.mxu1  ;;  %v1393_v22 = vpop.f32.mrf.mxu0 }
 0x1b4   :  { %1736 = vst [vmem:[#allocation8 + $0x250] sm:$0xff] %v1393_v22 }
 0x1b5   :  { %v1592_v35 = vpop.f32.mrf.mxu1  ;;  %v1395_v39 = vpop.f32.mrf.mxu0 }
 0x1b6   :  { %1738 = vst.msk [vmem:[#allocation8 + $0x260] sm:$0xff] %vm1667_vm1, %v1592_v35  ;;  %1737 = vst [vmem:[#allocation8 + $0x258] sm:$0xff] %v1395_v39 }
 0x1b7   :  { %v1594_v50 = vpop.f32.mrf.mxu1  ;;  %v1399_v54 = vpop.f32.mrf.mxu0 }
 0x1b8   :  { %1743 = vst [vmem:[#allocation8 + $0x288] sm:$0xff] %v1399_v54 }
 0x1b9   :  { %v1597_v2 = vpop.f32.mrf.mxu1  ;;  %v1401_v6 = vpop.f32.mrf.mxu0 }
 0x1ba   :  { %1745 = vst.msk [vmem:[#allocation8 + $0x298] sm:$0xff] %vm1667_vm1, %v1597_v2  ;;  %1744 = vst [vmem:[#allocation8 + $0x290] sm:$0xff] %v1401_v6 }
 0x1bb   :  { %v1599_v19 = vpop.f32.mrf.mxu1  ;;  %v1405_v24 = vpop.f32.mrf.mxu0 }
 0x1bc   :  { %1750 = vst [vmem:[#allocation8 + $0x2c0] sm:$0xff] %v1405_v24 }
 0x1bd   :  { %v1602_v40 = vpop.f32.mrf.mxu1  ;;  %v1407_v43 = vpop.f32.mrf.mxu0 }
 0x1be   :  { %1752 = vst.msk [vmem:[#allocation8 + $0x2d0] sm:$0xff] %vm1667_vm1, %v1602_v40  ;;  %1751 = vst [vmem:[#allocation8 + $0x2c8] sm:$0xff] %v1407_v43 }
 0x1bf   :  { %v1604_v58 = vpop.f32.mrf.mxu1  ;;  %v1411_v61 = vpop.f32.mrf.mxu0 }
 0x1c0   :  { %1757 = vst [vmem:[#allocation8 + $0x2f8] sm:$0xff] %v1411_v61 }
 0x1c1   :  { %v1607_v12 = vpop.f32.mrf.mxu1  ;;  %v1413_v15 = vpop.f32.mrf.mxu0 }
 0x1c2   :  { %1759 = vst.msk [vmem:[#allocation8 + $0x308] sm:$0xff] %vm1667_vm1, %v1607_v12  ;;  %1758 = vst [vmem:[#allocation8 + $0x300] sm:$0xff] %v1413_v15 }
 0x1c3   :  { %v1609_v33 = vpop.f32.mrf.mxu1  ;;  %v1417_v38 = vpop.f32.mrf.mxu0 }
 0x1c4   :  { %1764 = vst [vmem:[#allocation8 + $0x330] sm:$0xff] %v1417_v38 }
 0x1c5   :  { %v1612_v55 = vpop.f32.mrf.mxu1  ;;  %v1419_v60 = vpop.f32.mrf.mxu0 }
 0x1c6   :  { %1766 = vst.msk [vmem:[#allocation8 + $0x340] sm:$0xff] %vm1667_vm1, %v1612_v55  ;;  %1765 = vst [vmem:[#allocation8 + $0x338] sm:$0xff] %v1419_v60 }
 0x1c7   :  { %v1614_v13 = vpop.f32.mrf.mxu1  ;;  %v1423_v17 = vpop.f32.mrf.mxu0 }
 0x1c8   :  { %1771 = vst [vmem:[#allocation8 + $0x368] sm:$0xff] %v1423_v17 }
 0x1c9   :  { %v1617_v41 = vpop.f32.mrf.mxu1  ;;  %v1425_v45 = vpop.f32.mrf.mxu0 }
 0x1ca   :  { %1773 = vst.msk [vmem:[#allocation8 + $0x378] sm:$0xff] %vm1667_vm1, %v1617_v41  ;;  %1772 = vst [vmem:[#allocation8 + $0x370] sm:$0xff] %v1425_v45 }
 0x1cb   :  { %v1619_v0 = vpop.f32.mrf.mxu1  ;;  %v1429_v5 = vpop.f32.mrf.mxu0 }
 0x1cc   :  { %1778 = vst [vmem:[#allocation8 + $0x3a0] sm:$0xff] %v1429_v5 }
 0x1cd   :  { %v1622_v27 = vpop.f32.mrf.mxu1  ;;  %v1431_v32 = vpop.f32.mrf.mxu0 }
 0x1ce   :  { %1780 = vst.msk [vmem:[#allocation8 + $0x3b0] sm:$0xff] %vm1667_vm1, %v1622_v27  ;;  %1779 = vst [vmem:[#allocation8 + $0x3a8] sm:$0xff] %v1431_v32 }
 0x1cf   :  { %v1624_v56 = vpop.f32.mrf.mxu1  ;;  %v1435_v63 = vpop.f32.mrf.mxu0 }
 0x1d0   :  { %1785 = vst [vmem:[#allocation8 + $0x3d8] sm:$0xff] %v1435_v63 }
 0x1d1   :  { %v1627_v25 = vpop.f32.mrf.mxu1  ;;  %v1437_v30 = vpop.f32.mrf.mxu0 }
 0x1d2   :  { %1787 = vst.msk [vmem:[#allocation8 + $0x3e8] sm:$0xff] %vm1667_vm1, %v1627_v25  ;;  %1786 = vst [vmem:[#allocation8 + $0x3e0] sm:$0xff] %v1437_v30 }
 0x1d3   :  { %v1629_v59 = vpop.f32.mrf.mxu1  ;;  %v1441_v3 = vpop.f32.mrf.mxu0 }
 0x1d4   :  { %1792 = vst [vmem:[#allocation8 + $0x410] sm:$0xff] %v1441_v3 }
 0x1d5   :  { %v1632_v26 = vpop.f32.mrf.mxu1  ;;  %v1443_v28 = vpop.f32.mrf.mxu0 }
 0x1d6   :  { %1794 = vst.msk [vmem:[#allocation8 + $0x420] sm:$0xff] %vm1667_vm1, %v1632_v26  ;;  %1793 = vst [vmem:[#allocation8 + $0x418] sm:$0xff] %v1443_v28 }
 0x1d7   :  { %v1634_v34 = vpop.f32.mrf.mxu1  ;;  %v1447_v37 = vpop.f32.mrf.mxu0 }
 0x1d8   :  { %1799 = vst [vmem:[#allocation8 + $0x448] sm:$0xff] %v1447_v37 }
 0x1d9   :  { %v1637_v42 = vpop.f32.mrf.mxu1  ;;  %v1449_v44 = vpop.f32.mrf.mxu0 }
 0x1da   :  { %1801 = vst.msk [vmem:[#allocation8 + $0x458] sm:$0xff] %vm1667_vm1, %v1637_v42  ;;  %1800 = vst [vmem:[#allocation8 + $0x450] sm:$0xff] %v1449_v44 }
 0x1db   :  { %v1639_v46 = vpop.f32.mrf.mxu1  ;;  %v1453_v47 = vpop.f32.mrf.mxu0 }
 0x1dc   :  { %1806 = vst [vmem:[#allocation8 + $0x480] sm:$0xff] %v1453_v47 }
 0x1dd   :  { %v1642_v48 = vpop.f32.mrf.mxu1  ;;  %v1455_v49 = vpop.f32.mrf.mxu0 }
 0x1de   :  { %1808 = vst.msk [vmem:[#allocation8 + $0x490] sm:$0xff] %vm1667_vm1, %v1642_v48  ;;  %1807 = vst [vmem:[#allocation8 + $0x488] sm:$0xff] %v1455_v49 }
 0x1df   :  { %v1644_v51 = vpop.f32.mrf.mxu1  ;;  %v1459_v53 = vpop.f32.mrf.mxu0 }
 0x1e0   :  { %1813 = vst [vmem:[#allocation8 + $0x4b8] sm:$0xff] %v1459_v53 }
 0x1e1   :  { %v1647_v62 = vpop.f32.mrf.mxu1  ;;  %v1461_v1 = vpop.f32.mrf.mxu0 }
 0x1e2   :  { %1815 = vst.msk [vmem:[#allocation8 + $0x4c8] sm:$0xff] %vm1667_vm1, %v1647_v62  ;;  %1814 = vst [vmem:[#allocation8 + $0x4c0] sm:$0xff] %v1461_v1 }
 0x1e3   :  { %v1649_v8 = vpop.f32.mrf.mxu1  ;;  %v1465_v9 = vpop.f32.mrf.mxu0 }
 0x1e4   :  { %1820 = vst [vmem:[#allocation8 + $0x4f0] sm:$0xff] %v1465_v9 }
 0x1e5   :  { %v1652_v10 = vpop.f32.mrf.mxu1  ;;  %v1467_v11 = vpop.f32.mrf.mxu0 }
 0x1e6   :  { %1822 = vst.msk [vmem:[#allocation8 + $0x500] sm:$0xff] %vm1667_vm1, %v1652_v10  ;;  %1821 = vst [vmem:[#allocation8 + $0x4f8] sm:$0xff] %v1467_v11 }
 0x1e7   :  { %v1654_v14 = vpop.f32.mrf.mxu1  ;;  %v1471_v16 = vpop.f32.mrf.mxu0 }
 0x1e8   :  { %1827 = vst [vmem:[#allocation8 + $0x528] sm:$0xff] %v1471_v16 }
 0x1e9   :  { %v1657_v21 = vpop.f32.mrf.mxu1  ;;  %v1473_v23 = vpop.f32.mrf.mxu0 }
 0x1ea   :  { %1829 = vst.msk [vmem:[#allocation8 + $0x538] sm:$0xff] %vm1667_vm1, %v1657_v21  ;;  %1828 = vst [vmem:[#allocation8 + $0x530] sm:$0xff] %v1473_v23 }
 0x1eb   :  { %v1659_v29 = vpop.f32.mrf.mxu1 }
 0x1ec   :  { %2028 = shalt.err (!%p2025_p5)
}
 0x1ed   :  { %1841 = dma.vmem_to_hbm [thread:$0]  %s1836_s2, 21504, %s2509_s3, [#allocation4], %s2045_s17, %s2045_s17, %s2046_s18  }
 0x1ee   :  { %2041 = dma.done.wait [#allocation4], 21504  }
 0x1ef   :  { %2042 = vsyncadd [#allocation4], 4294945792 }
 0x1f0   :  { %1845 = vsyncpa [#allocation3], 1 }
 0x1f1   :  { %1846 = vsyncpa [#allocation6], 1 }
 0x1f2   :  { %1847 = vsyncpa [#allocation4], 1 }

</bundles_post_ra>
